<compile_context>
chip_gen: v5e
topology: v5e:2x2
jax: 0.10.0
libtpu: 0.0.40
codegen_flags: <defaults>
</compile_context>

<pallas_src>
import functools

import jax
import jax.numpy as jnp
from jax.experimental import pallas as pl

# ---- model hyper-parameters (small, consistent with the module) ----
MODEL_HIDDEN = 32   # model_hidden
N_HEADS = 4         # n_heads
HIDDEN_DIM = 8      # hidden_dim (= d_q = d_k = d_v)
BATCH = 2
SEQ = 8

HD = N_HEADS * HIDDEN_DIM   # 32 (== MODEL_HIDDEN in this config)
LN_EPS = 1e-5
_HIGHEST = jax.lax.Precision.HIGHEST


def _mha_kernel(q_ref, k_ref, v_ref, w_ref, misc_ref, out_ref, *, batch, seq):
    """Whole forward pass in one gridless invocation.

    q_ref/k_ref/v_ref : (B*S, MH)   activations, flattened over (batch, seq)
    w_ref             : (4, MH, MH) [Wq, Wk, Wv, Wo], each stored [in, out]
    misc_ref          : (6, MH)     rows [bq, bk, bv, bo, ln_gamma, ln_beta]
    out_ref           : (B*S, MH)
    """
    scale = 1.0 / jnp.sqrt(jnp.float32(HIDDEN_DIM))
    misc = misc_ref[...]                                   # (6, MH), one vreg tile

    def matmul(a, b):
        return jnp.dot(a, b, precision=_HIGHEST, preferred_element_type=jnp.float32)

    # --- full-width QKV projections: three (BS,32)@(32,32) MXU calls ---
    q_full = matmul(q_ref[...], w_ref[0]) + misc[0:1]      # (BS, HD)
    k_full = matmul(k_ref[...], w_ref[1]) + misc[1:2]
    v_full = matmul(v_ref[...], w_ref[2]) + misc[2:3]
    wo = w_ref[3]                                          # (HD, MH)

    # --- per-head attention (4 static iterations), batched over batch inside each ---
    # Heads stay on static lane slices; the per-head output-projection fold + sum over
    # heads equals concat-heads-then-one-matmul, so no lane concatenate or head-major
    # relayout is ever materialized.
    output = None
    for h in range(N_HEADS):                               # static, unrolled (4 iters)
        lo, hi = h * HIDDEN_DIM, (h + 1) * HIDDEN_DIM
        q_h = q_full[:, lo:hi].reshape(batch, seq, HIDDEN_DIM)
        k_h = k_full[:, lo:hi].reshape(batch, seq, HIDDEN_DIM)
        v_h = v_full[:, lo:hi].reshape(batch, seq, HIDDEN_DIM)

        s = jnp.einsum("bqd,bkd->bqk", q_h, k_h,
                       precision=_HIGHEST,
                       preferred_element_type=jnp.float32) * scale      # (B, S, S)
        s = s - jnp.max(s, axis=-1, keepdims=True)
        p = jnp.exp(s)
        attn = p / jnp.sum(p, axis=-1, keepdims=True)      # exact divide (bit-parity)
        ctx = jnp.einsum("bqk,bkd->bqd", attn, v_h,
                         precision=_HIGHEST,
                         preferred_element_type=jnp.float32)            # (B, S, D)

        part = matmul(ctx.reshape(batch * seq, HIDDEN_DIM), wo[lo:hi, :])  # (BS, MH)
        output = part if output is None else output + part

    output = output + misc[3:4]                            # + b_out

    # --- LayerNorm over last dim (population variance, eps=1e-5, affine) ---
    mean = jnp.mean(output, axis=-1, keepdims=True)
    centered = output - mean
    var = jnp.mean(centered * centered, axis=-1, keepdims=True)
    normed = centered * jax.lax.rsqrt(var + LN_EPS)

    out_ref[...] = (normed * misc[4:5] + misc[5:6]).astype(out_ref.dtype)


def pack_params(params):
    """ONE-TIME packing of module parameters into two lane-friendly slabs.
    Call this once at init (or whenever params change); the hot path takes the
    packed dict, never the raw params."""
    assert HD == MODEL_HIDDEN, "slab packing assumes n_heads*hidden_dim == model_hidden"
    w_all = jnp.stack([params["wq"], params["wk"], params["wv"], params["wo"]],
                      axis=0).astype(jnp.float32)                         # (4, 32, 32)
    misc = jnp.concatenate([params["bq"], params["bk"], params["bv"],
                            params["bo"], params["ln_g"], params["ln_b"]],
                           axis=0).astype(jnp.float32)                    # (6, 32)
    return {"w_all": w_all, "misc": misc}


@jax.jit
def multi_head_attention(Q, K, V, packed):
    B, S, MH = Q.shape
    assert MH == MODEL_HIDDEN
    BS = B * S

    # Pass-through hot path: leading-dim flattens only (no per-call packing/stacking).
    q2d = Q.reshape(BS, MH)
    k2d = K.reshape(BS, MH)
    v2d = V.reshape(BS, MH)

    flops = 2 * (3 * BS * MH * HD                          # QKV projections
                 + 2 * B * N_HEADS * S * S * HIDDEN_DIM    # scores + context
                 + BS * HD * MH)                           # output projection
    transcendentals = B * N_HEADS * S * S
    bytes_accessed = 4 * (3 * BS * MH + packed["w_all"].size
                          + packed["misc"].size + BS * MH)

    out = pl.pallas_call(
        functools.partial(_mha_kernel, batch=B, seq=S),
        out_shape=jax.ShapeDtypeStruct((BS, MH), jnp.float32),
        cost_estimate=pl.CostEstimate(flops=flops,
                                      transcendentals=transcendentals,
                                      bytes_accessed=bytes_accessed),
    )(q2d, k2d, v2d, packed["w_all"], packed["misc"])

    # TODO(synk): on v7x (2 TensorCores) with a larger batch, reintroduce grid=(B,) or
    # grid=(H*B,) with dimension_semantics=("parallel",); at B=2/S=8 a gridless
    # single-TC call minimizes the ~0.35us/step grid overhead.
    return out.reshape(B, S, MH)


def init_params(key):
    """Deterministic parameter init (PyTorch nn.Linear-style uniform bounds).
    Weights are stored pre-transposed as [in_features, out_features]."""
    keys = jax.random.split(key, 8)

    def linear(kw, kb, fan_in, fan_out):
        bound = 1.0 / jnp.sqrt(jnp.float32(fan_in))
        w = jax.random.uniform(kw, (fan_in, fan_out), jnp.float32, -bound, bound)
        b = jax.random.uniform(kb, (1, fan_out), jnp.float32, -bound, bound)
        return w, b

    wq, bq = linear(keys[0], keys[1], MODEL_HIDDEN, HD)
    wk, bk = linear(keys[2], keys[3], MODEL_HIDDEN, HD)
    wv, bv = linear(keys[4], keys[5], MODEL_HIDDEN, HD)
    wo, bo = linear(keys[6], keys[7], HD, MODEL_HIDDEN)
    return {
        "wq": wq, "bq": bq,
        "wk": wk, "bk": bk,
        "wv": wv, "bv": bv,
        "wo": wo, "bo": bo,
        "ln_g": jnp.ones((1, MODEL_HIDDEN), jnp.float32),
        "ln_b": jnp.zeros((1, MODEL_HIDDEN), jnp.float32),
    }


def reference_mha(Q, K, V, params):
    """Pure-JAX reference mirroring the PyTorch forward (HIGHEST-precision matmuls)."""
    B, S, _ = Q.shape

    def proj(x, w, b):
        y = jnp.einsum("bsm,md->bsd", x, w, precision=_HIGHEST) + b[0]
        return y.reshape(B, S, N_HEADS, HIDDEN_DIM).transpose(0, 2, 1, 3)

    q_s = proj(Q, params["wq"], params["bq"])
    k_s = proj(K, params["wk"], params["bk"])
    v_s = proj(V, params["wv"], params["bv"])
    scores = jnp.einsum("bhqd,bhkd->bhqk", q_s, k_s,
                        precision=_HIGHEST) / jnp.sqrt(jnp.float32(HIDDEN_DIM))
    attn = jax.nn.softmax(scores, axis=-1)
    ctx = jnp.einsum("bhqk,bhkd->bhqd", attn, v_s, precision=_HIGHEST)
    ctx = ctx.transpose(0, 2, 1, 3).reshape(B, S, HD)
    out = jnp.einsum("bsd,dm->bsm", ctx, params["wo"], precision=_HIGHEST) + params["bo"][0]
    mean = out.mean(-1, keepdims=True)
    var = ((out - mean) ** 2).mean(-1, keepdims=True)
    normed = (out - mean) / jnp.sqrt(var + LN_EPS)
    return normed * params["ln_g"][0] + params["ln_b"][0]


if __name__ == "__main__":
    key = jax.random.PRNGKey(0)
    kq, kk, kv, kp = jax.random.split(key, 4)
    Q = jax.random.normal(kq, (BATCH, SEQ, MODEL_HIDDEN), jnp.float32)
    K = jax.random.normal(kk, (BATCH, SEQ, MODEL_HIDDEN), jnp.float32)
    V = jax.random.normal(kv, (BATCH, SEQ, MODEL_HIDDEN), jnp.float32)
    params = init_params(kp)
    packed = pack_params(params)          # one-time packing, hoisted out of hot path

    out = multi_head_attention(Q, K, V, packed)
    out = jax.block_until_ready(out)

    ref = reference_mha(Q, K, V, params)
    assert out.shape == (BATCH, SEQ, MODEL_HIDDEN)
    assert jnp.allclose(out, ref, atol=1e-3, rtol=1e-3), "mismatch vs reference"

    print("KERNEL_OK")
</pallas_src>

<mosaic_0001>
module attributes {stable_mosaic.version = 11 : i64} {
  func.func @_mha_kernel(%arg0: memref<16x32xf32, #tpu.memory_space<vmem>>, %arg1: memref<16x32xf32, #tpu.memory_space<vmem>>, %arg2: memref<16x32xf32, #tpu.memory_space<vmem>>, %arg3: memref<4x32x32xf32, #tpu.memory_space<vmem>>, %arg4: memref<6x32xf32, #tpu.memory_space<vmem>>, %arg5: memref<16x32xf32, #tpu.memory_space<vmem>>) attributes {dimension_semantics = [], scalar_prefetch = 0 : i64, scratch_operands = 0 : i64, tpu.core_type = #tpu.core_type<tc>} {
    %cst = arith.constant 8.000000e+00 : f32
    %0 = math.sqrt %cst : f32
    %cst_0 = arith.constant 1.000000e+00 : f32
    %1 = arith.divf %cst_0, %0 : f32
    %c0 = arith.constant 0 : index
    %c0_1 = arith.constant 0 : index
    %2 = vector.load %arg4[%c0, %c0_1] : memref<6x32xf32, #tpu.memory_space<vmem>>, vector<6x32xf32>
    %c0_2 = arith.constant 0 : index
    %c0_3 = arith.constant 0 : index
    %3 = vector.load %arg0[%c0_2, %c0_3] : memref<16x32xf32, #tpu.memory_space<vmem>>, vector<16x32xf32>
    %c0_4 = arith.constant 0 : index
    %c0_5 = arith.constant 0 : index
    %c0_6 = arith.constant 0 : index
    %4 = vector.load %arg3[%c0_4, %c0_5, %c0_6] : memref<4x32x32xf32, #tpu.memory_space<vmem>>, vector<1x32x32xf32>
    %5 = vector.shape_cast %4 : vector<1x32x32xf32> to vector<32x32xf32>
    %cst_7 = arith.constant dense<0.000000e+00> : vector<16x32xf32>
    %6 = tpu.matmul %3, %5, %cst_7 {dimension_numbers = #tpu.dot_dimension_numbers<[1], [0], [0], [1], [0, 0, 1, 1], [], []>, precision = #tpu.contract_precision<fp32>} : vector<16x32xf32>, vector<32x32xf32>, vector<16x32xf32> -> vector<16x32xf32>
    %7 = vector.extract_strided_slice %2 {offsets = [0, 0], sizes = [1, 32], strides = [1, 1]} : vector<6x32xf32> to vector<1x32xf32>
    %8 = vector.broadcast %7 : vector<1x32xf32> to vector<16x32xf32>
    %9 = arith.addf %6, %8 : vector<16x32xf32>
    %c0_8 = arith.constant 0 : index
    %c0_9 = arith.constant 0 : index
    %10 = vector.load %arg1[%c0_8, %c0_9] : memref<16x32xf32, #tpu.memory_space<vmem>>, vector<16x32xf32>
    %c1 = arith.constant 1 : index
    %c0_10 = arith.constant 0 : index
    %c0_11 = arith.constant 0 : index
    %11 = vector.load %arg3[%c1, %c0_10, %c0_11] : memref<4x32x32xf32, #tpu.memory_space<vmem>>, vector<1x32x32xf32>
    %12 = vector.shape_cast %11 : vector<1x32x32xf32> to vector<32x32xf32>
    %cst_12 = arith.constant dense<0.000000e+00> : vector<16x32xf32>
    %13 = tpu.matmul %10, %12, %cst_12 {dimension_numbers = #tpu.dot_dimension_numbers<[1], [0], [0], [1], [0, 0, 1, 1], [], []>, precision = #tpu.contract_precision<fp32>} : vector<16x32xf32>, vector<32x32xf32>, vector<16x32xf32> -> vector<16x32xf32>
    %14 = vector.extract_strided_slice %2 {offsets = [1, 0], sizes = [1, 32], strides = [1, 1]} : vector<6x32xf32> to vector<1x32xf32>
    %15 = vector.broadcast %14 : vector<1x32xf32> to vector<16x32xf32>
    %16 = arith.addf %13, %15 : vector<16x32xf32>
    %c0_13 = arith.constant 0 : index
    %c0_14 = arith.constant 0 : index
    %17 = vector.load %arg2[%c0_13, %c0_14] : memref<16x32xf32, #tpu.memory_space<vmem>>, vector<16x32xf32>
    %c2 = arith.constant 2 : index
    %c0_15 = arith.constant 0 : index
    %c0_16 = arith.constant 0 : index
    %18 = vector.load %arg3[%c2, %c0_15, %c0_16] : memref<4x32x32xf32, #tpu.memory_space<vmem>>, vector<1x32x32xf32>
    %19 = vector.shape_cast %18 : vector<1x32x32xf32> to vector<32x32xf32>
    %cst_17 = arith.constant dense<0.000000e+00> : vector<16x32xf32>
    %20 = tpu.matmul %17, %19, %cst_17 {dimension_numbers = #tpu.dot_dimension_numbers<[1], [0], [0], [1], [0, 0, 1, 1], [], []>, precision = #tpu.contract_precision<fp32>} : vector<16x32xf32>, vector<32x32xf32>, vector<16x32xf32> -> vector<16x32xf32>
    %21 = vector.extract_strided_slice %2 {offsets = [2, 0], sizes = [1, 32], strides = [1, 1]} : vector<6x32xf32> to vector<1x32xf32>
    %22 = vector.broadcast %21 : vector<1x32xf32> to vector<16x32xf32>
    %23 = arith.addf %20, %22 : vector<16x32xf32>
    %c3 = arith.constant 3 : index
    %c0_18 = arith.constant 0 : index
    %c0_19 = arith.constant 0 : index
    %24 = vector.load %arg3[%c3, %c0_18, %c0_19] : memref<4x32x32xf32, #tpu.memory_space<vmem>>, vector<1x32x32xf32>
    %25 = vector.shape_cast %24 : vector<1x32x32xf32> to vector<32x32xf32>
    %26 = vector.extract_strided_slice %9 {offsets = [0, 0], sizes = [16, 8], strides = [1, 1]} : vector<16x32xf32> to vector<16x8xf32>
    %27 = vector.shape_cast %26 : vector<16x8xf32> to vector<2x8x8xf32>
    %28 = vector.extract_strided_slice %16 {offsets = [0, 0], sizes = [16, 8], strides = [1, 1]} : vector<16x32xf32> to vector<16x8xf32>
    %29 = vector.shape_cast %28 : vector<16x8xf32> to vector<2x8x8xf32>
    %30 = vector.extract_strided_slice %23 {offsets = [0, 0], sizes = [16, 8], strides = [1, 1]} : vector<16x32xf32> to vector<16x8xf32>
    %31 = vector.shape_cast %30 : vector<16x8xf32> to vector<2x8x8xf32>
    "tpu.trace_start"() <{level = 10 : i32, message = "bqd,bkd->bqk"}> : () -> ()
    %cst_20 = arith.constant dense<0.000000e+00> : vector<2x8x8xf32>
    %32 = tpu.matmul %27, %29, %cst_20 {dimension_numbers = #tpu.dot_dimension_numbers<[2], [2], [1], [1], [0, 0, 0, 1, 1, 1], [0], [0]>, precision = #tpu.contract_precision<fp32>} : vector<2x8x8xf32>, vector<2x8x8xf32>, vector<2x8x8xf32> -> vector<2x8x8xf32>
    "tpu.trace_stop"() : () -> ()
    %33 = vector.broadcast %1 : f32 to vector<2x8x8xf32>
    %34 = arith.mulf %32, %33 : vector<2x8x8xf32>
    %cst_21 = arith.constant dense<0xFF800000> : vector<2x8xf32>
    %35 = vector.multi_reduction <maximumf>, %34, %cst_21 [2] : vector<2x8x8xf32> to vector<2x8xf32>
    %36 = vector.shape_cast %35 : vector<2x8xf32> to vector<2x8x1xf32>
    %37 = vector.broadcast %36 : vector<2x8x1xf32> to vector<2x8x8xf32>
    %38 = arith.subf %34, %37 : vector<2x8x8xf32>
    %39 = math.exp %38 : vector<2x8x8xf32>
    %cst_22 = arith.constant dense<0.000000e+00> : vector<2x8xf32>
    %40 = vector.multi_reduction <add>, %39, %cst_22 [2] : vector<2x8x8xf32> to vector<2x8xf32>
    %41 = vector.shape_cast %40 : vector<2x8xf32> to vector<2x8x1xf32>
    %42 = vector.broadcast %41 : vector<2x8x1xf32> to vector<2x8x8xf32>
    %43 = arith.divf %39, %42 : vector<2x8x8xf32>
    "tpu.trace_start"() <{level = 10 : i32, message = "bqk,bkd->bqd"}> : () -> ()
    %cst_23 = arith.constant dense<0.000000e+00> : vector<2x8x8xf32>
    %44 = tpu.matmul %43, %31, %cst_23 {dimension_numbers = #tpu.dot_dimension_numbers<[2], [1], [1], [2], [0, 0, 0, 1, 1, 2], [0], [0]>, precision = #tpu.contract_precision<fp32>} : vector<2x8x8xf32>, vector<2x8x8xf32>, vector<2x8x8xf32> -> vector<2x8x8xf32>
    "tpu.trace_stop"() : () -> ()
    %45 = vector.shape_cast %44 : vector<2x8x8xf32> to vector<16x8xf32>
    %46 = vector.extract_strided_slice %25 {offsets = [0, 0], sizes = [8, 32], strides = [1, 1]} : vector<32x32xf32> to vector<8x32xf32>
    %cst_24 = arith.constant dense<0.000000e+00> : vector<16x32xf32>
    %47 = tpu.matmul %45, %46, %cst_24 {dimension_numbers = #tpu.dot_dimension_numbers<[1], [0], [0], [1], [0, 0, 1, 1], [], []>, precision = #tpu.contract_precision<fp32>} : vector<16x8xf32>, vector<8x32xf32>, vector<16x32xf32> -> vector<16x32xf32>
    %48 = vector.extract_strided_slice %9 {offsets = [0, 8], sizes = [16, 8], strides = [1, 1]} : vector<16x32xf32> to vector<16x8xf32>
    %49 = vector.shape_cast %48 : vector<16x8xf32> to vector<2x8x8xf32>
    %50 = vector.extract_strided_slice %16 {offsets = [0, 8], sizes = [16, 8], strides = [1, 1]} : vector<16x32xf32> to vector<16x8xf32>
    %51 = vector.shape_cast %50 : vector<16x8xf32> to vector<2x8x8xf32>
    %52 = vector.extract_strided_slice %23 {offsets = [0, 8], sizes = [16, 8], strides = [1, 1]} : vector<16x32xf32> to vector<16x8xf32>
    %53 = vector.shape_cast %52 : vector<16x8xf32> to vector<2x8x8xf32>
    "tpu.trace_start"() <{level = 10 : i32, message = "bqd,bkd->bqk"}> : () -> ()
    %cst_25 = arith.constant dense<0.000000e+00> : vector<2x8x8xf32>
    %54 = tpu.matmul %49, %51, %cst_25 {dimension_numbers = #tpu.dot_dimension_numbers<[2], [2], [1], [1], [0, 0, 0, 1, 1, 1], [0], [0]>, precision = #tpu.contract_precision<fp32>} : vector<2x8x8xf32>, vector<2x8x8xf32>, vector<2x8x8xf32> -> vector<2x8x8xf32>
    "tpu.trace_stop"() : () -> ()
    %55 = vector.broadcast %1 : f32 to vector<2x8x8xf32>
    %56 = arith.mulf %54, %55 : vector<2x8x8xf32>
    %cst_26 = arith.constant dense<0xFF800000> : vector<2x8xf32>
    %57 = vector.multi_reduction <maximumf>, %56, %cst_26 [2] : vector<2x8x8xf32> to vector<2x8xf32>
    %58 = vector.shape_cast %57 : vector<2x8xf32> to vector<2x8x1xf32>
    %59 = vector.broadcast %58 : vector<2x8x1xf32> to vector<2x8x8xf32>
    %60 = arith.subf %56, %59 : vector<2x8x8xf32>
    %61 = math.exp %60 : vector<2x8x8xf32>
    %cst_27 = arith.constant dense<0.000000e+00> : vector<2x8xf32>
    %62 = vector.multi_reduction <add>, %61, %cst_27 [2] : vector<2x8x8xf32> to vector<2x8xf32>
    %63 = vector.shape_cast %62 : vector<2x8xf32> to vector<2x8x1xf32>
    %64 = vector.broadcast %63 : vector<2x8x1xf32> to vector<2x8x8xf32>
    %65 = arith.divf %61, %64 : vector<2x8x8xf32>
    "tpu.trace_start"() <{level = 10 : i32, message = "bqk,bkd->bqd"}> : () -> ()
    %cst_28 = arith.constant dense<0.000000e+00> : vector<2x8x8xf32>
    %66 = tpu.matmul %65, %53, %cst_28 {dimension_numbers = #tpu.dot_dimension_numbers<[2], [1], [1], [2], [0, 0, 0, 1, 1, 2], [0], [0]>, precision = #tpu.contract_precision<fp32>} : vector<2x8x8xf32>, vector<2x8x8xf32>, vector<2x8x8xf32> -> vector<2x8x8xf32>
    "tpu.trace_stop"() : () -> ()
    %67 = vector.shape_cast %66 : vector<2x8x8xf32> to vector<16x8xf32>
    %68 = vector.extract_strided_slice %25 {offsets = [8, 0], sizes = [8, 32], strides = [1, 1]} : vector<32x32xf32> to vector<8x32xf32>
    %cst_29 = arith.constant dense<0.000000e+00> : vector<16x32xf32>
    %69 = tpu.matmul %67, %68, %cst_29 {dimension_numbers = #tpu.dot_dimension_numbers<[1], [0], [0], [1], [0, 0, 1, 1], [], []>, precision = #tpu.contract_precision<fp32>} : vector<16x8xf32>, vector<8x32xf32>, vector<16x32xf32> -> vector<16x32xf32>
    %70 = arith.addf %47, %69 : vector<16x32xf32>
    %71 = vector.extract_strided_slice %9 {offsets = [0, 16], sizes = [16, 8], strides = [1, 1]} : vector<16x32xf32> to vector<16x8xf32>
    %72 = vector.shape_cast %71 : vector<16x8xf32> to vector<2x8x8xf32>
    %73 = vector.extract_strided_slice %16 {offsets = [0, 16], sizes = [16, 8], strides = [1, 1]} : vector<16x32xf32> to vector<16x8xf32>
    %74 = vector.shape_cast %73 : vector<16x8xf32> to vector<2x8x8xf32>
    %75 = vector.extract_strided_slice %23 {offsets = [0, 16], sizes = [16, 8], strides = [1, 1]} : vector<16x32xf32> to vector<16x8xf32>
    %76 = vector.shape_cast %75 : vector<16x8xf32> to vector<2x8x8xf32>
    "tpu.trace_start"() <{level = 10 : i32, message = "bqd,bkd->bqk"}> : () -> ()
    %cst_30 = arith.constant dense<0.000000e+00> : vector<2x8x8xf32>
    %77 = tpu.matmul %72, %74, %cst_30 {dimension_numbers = #tpu.dot_dimension_numbers<[2], [2], [1], [1], [0, 0, 0, 1, 1, 1], [0], [0]>, precision = #tpu.contract_precision<fp32>} : vector<2x8x8xf32>, vector<2x8x8xf32>, vector<2x8x8xf32> -> vector<2x8x8xf32>
    "tpu.trace_stop"() : () -> ()
    %78 = vector.broadcast %1 : f32 to vector<2x8x8xf32>
    %79 = arith.mulf %77, %78 : vector<2x8x8xf32>
    %cst_31 = arith.constant dense<0xFF800000> : vector<2x8xf32>
    %80 = vector.multi_reduction <maximumf>, %79, %cst_31 [2] : vector<2x8x8xf32> to vector<2x8xf32>
    %81 = vector.shape_cast %80 : vector<2x8xf32> to vector<2x8x1xf32>
    %82 = vector.broadcast %81 : vector<2x8x1xf32> to vector<2x8x8xf32>
    %83 = arith.subf %79, %82 : vector<2x8x8xf32>
    %84 = math.exp %83 : vector<2x8x8xf32>
    %cst_32 = arith.constant dense<0.000000e+00> : vector<2x8xf32>
    %85 = vector.multi_reduction <add>, %84, %cst_32 [2] : vector<2x8x8xf32> to vector<2x8xf32>
    %86 = vector.shape_cast %85 : vector<2x8xf32> to vector<2x8x1xf32>
    %87 = vector.broadcast %86 : vector<2x8x1xf32> to vector<2x8x8xf32>
    %88 = arith.divf %84, %87 : vector<2x8x8xf32>
    "tpu.trace_start"() <{level = 10 : i32, message = "bqk,bkd->bqd"}> : () -> ()
    %cst_33 = arith.constant dense<0.000000e+00> : vector<2x8x8xf32>
    %89 = tpu.matmul %88, %76, %cst_33 {dimension_numbers = #tpu.dot_dimension_numbers<[2], [1], [1], [2], [0, 0, 0, 1, 1, 2], [0], [0]>, precision = #tpu.contract_precision<fp32>} : vector<2x8x8xf32>, vector<2x8x8xf32>, vector<2x8x8xf32> -> vector<2x8x8xf32>
    "tpu.trace_stop"() : () -> ()
    %90 = vector.shape_cast %89 : vector<2x8x8xf32> to vector<16x8xf32>
    %91 = vector.extract_strided_slice %25 {offsets = [16, 0], sizes = [8, 32], strides = [1, 1]} : vector<32x32xf32> to vector<8x32xf32>
    %cst_34 = arith.constant dense<0.000000e+00> : vector<16x32xf32>
    %92 = tpu.matmul %90, %91, %cst_34 {dimension_numbers = #tpu.dot_dimension_numbers<[1], [0], [0], [1], [0, 0, 1, 1], [], []>, precision = #tpu.contract_precision<fp32>} : vector<16x8xf32>, vector<8x32xf32>, vector<16x32xf32> -> vector<16x32xf32>
    %93 = arith.addf %70, %92 : vector<16x32xf32>
    %94 = vector.extract_strided_slice %9 {offsets = [0, 24], sizes = [16, 8], strides = [1, 1]} : vector<16x32xf32> to vector<16x8xf32>
    %95 = vector.shape_cast %94 : vector<16x8xf32> to vector<2x8x8xf32>
    %96 = vector.extract_strided_slice %16 {offsets = [0, 24], sizes = [16, 8], strides = [1, 1]} : vector<16x32xf32> to vector<16x8xf32>
    %97 = vector.shape_cast %96 : vector<16x8xf32> to vector<2x8x8xf32>
    %98 = vector.extract_strided_slice %23 {offsets = [0, 24], sizes = [16, 8], strides = [1, 1]} : vector<16x32xf32> to vector<16x8xf32>
    %99 = vector.shape_cast %98 : vector<16x8xf32> to vector<2x8x8xf32>
    "tpu.trace_start"() <{level = 10 : i32, message = "bqd,bkd->bqk"}> : () -> ()
    %cst_35 = arith.constant dense<0.000000e+00> : vector<2x8x8xf32>
    %100 = tpu.matmul %95, %97, %cst_35 {dimension_numbers = #tpu.dot_dimension_numbers<[2], [2], [1], [1], [0, 0, 0, 1, 1, 1], [0], [0]>, precision = #tpu.contract_precision<fp32>} : vector<2x8x8xf32>, vector<2x8x8xf32>, vector<2x8x8xf32> -> vector<2x8x8xf32>
    "tpu.trace_stop"() : () -> ()
    %101 = vector.broadcast %1 : f32 to vector<2x8x8xf32>
    %102 = arith.mulf %100, %101 : vector<2x8x8xf32>
    %cst_36 = arith.constant dense<0xFF800000> : vector<2x8xf32>
    %103 = vector.multi_reduction <maximumf>, %102, %cst_36 [2] : vector<2x8x8xf32> to vector<2x8xf32>
    %104 = vector.shape_cast %103 : vector<2x8xf32> to vector<2x8x1xf32>
    %105 = vector.broadcast %104 : vector<2x8x1xf32> to vector<2x8x8xf32>
    %106 = arith.subf %102, %105 : vector<2x8x8xf32>
    %107 = math.exp %106 : vector<2x8x8xf32>
    %cst_37 = arith.constant dense<0.000000e+00> : vector<2x8xf32>
    %108 = vector.multi_reduction <add>, %107, %cst_37 [2] : vector<2x8x8xf32> to vector<2x8xf32>
    %109 = vector.shape_cast %108 : vector<2x8xf32> to vector<2x8x1xf32>
    %110 = vector.broadcast %109 : vector<2x8x1xf32> to vector<2x8x8xf32>
    %111 = arith.divf %107, %110 : vector<2x8x8xf32>
    "tpu.trace_start"() <{level = 10 : i32, message = "bqk,bkd->bqd"}> : () -> ()
    %cst_38 = arith.constant dense<0.000000e+00> : vector<2x8x8xf32>
    %112 = tpu.matmul %111, %99, %cst_38 {dimension_numbers = #tpu.dot_dimension_numbers<[2], [1], [1], [2], [0, 0, 0, 1, 1, 2], [0], [0]>, precision = #tpu.contract_precision<fp32>} : vector<2x8x8xf32>, vector<2x8x8xf32>, vector<2x8x8xf32> -> vector<2x8x8xf32>
    "tpu.trace_stop"() : () -> ()
    %113 = vector.shape_cast %112 : vector<2x8x8xf32> to vector<16x8xf32>
    %114 = vector.extract_strided_slice %25 {offsets = [24, 0], sizes = [8, 32], strides = [1, 1]} : vector<32x32xf32> to vector<8x32xf32>
    %cst_39 = arith.constant dense<0.000000e+00> : vector<16x32xf32>
    %115 = tpu.matmul %113, %114, %cst_39 {dimension_numbers = #tpu.dot_dimension_numbers<[1], [0], [0], [1], [0, 0, 1, 1], [], []>, precision = #tpu.contract_precision<fp32>} : vector<16x8xf32>, vector<8x32xf32>, vector<16x32xf32> -> vector<16x32xf32>
    %116 = arith.addf %93, %115 : vector<16x32xf32>
    %117 = vector.extract_strided_slice %2 {offsets = [3, 0], sizes = [1, 32], strides = [1, 1]} : vector<6x32xf32> to vector<1x32xf32>
    %118 = vector.broadcast %117 : vector<1x32xf32> to vector<16x32xf32>
    %119 = arith.addf %116, %118 : vector<16x32xf32>
    %cst_40 = arith.constant dense<0.000000e+00> : vector<16xf32>
    %120 = vector.multi_reduction <add>, %119, %cst_40 [1] : vector<16x32xf32> to vector<16xf32>
    %121 = vector.shape_cast %120 : vector<16xf32> to vector<16x1xf32>
    %cst_41 = arith.constant 3.200000e+01 : f32
    %122 = vector.broadcast %cst_41 : f32 to vector<16x1xf32>
    %123 = arith.divf %121, %122 : vector<16x1xf32>
    %124 = vector.broadcast %123 : vector<16x1xf32> to vector<16x32xf32>
    %125 = arith.subf %119, %124 : vector<16x32xf32>
    %126 = arith.mulf %125, %125 : vector<16x32xf32>
    %cst_42 = arith.constant dense<0.000000e+00> : vector<16xf32>
    %127 = vector.multi_reduction <add>, %126, %cst_42 [1] : vector<16x32xf32> to vector<16xf32>
    %128 = vector.shape_cast %127 : vector<16xf32> to vector<16x1xf32>
    %cst_43 = arith.constant 3.200000e+01 : f32
    %129 = vector.broadcast %cst_43 : f32 to vector<16x1xf32>
    %130 = arith.divf %128, %129 : vector<16x1xf32>
    %cst_44 = arith.constant 9.99999974E-6 : f32
    %131 = vector.broadcast %cst_44 : f32 to vector<16x1xf32>
    %132 = arith.addf %130, %131 : vector<16x1xf32>
    %133 = math.rsqrt %132 : vector<16x1xf32>
    %134 = vector.broadcast %133 : vector<16x1xf32> to vector<16x32xf32>
    %135 = arith.mulf %125, %134 : vector<16x32xf32>
    %136 = vector.extract_strided_slice %2 {offsets = [4, 0], sizes = [1, 32], strides = [1, 1]} : vector<6x32xf32> to vector<1x32xf32>
    %137 = vector.broadcast %136 : vector<1x32xf32> to vector<16x32xf32>
    %138 = arith.mulf %135, %137 : vector<16x32xf32>
    %139 = vector.extract_strided_slice %2 {offsets = [5, 0], sizes = [1, 32], strides = [1, 1]} : vector<6x32xf32> to vector<1x32xf32>
    %140 = vector.broadcast %139 : vector<1x32xf32> to vector<16x32xf32>
    %141 = arith.addf %138, %140 : vector<16x32xf32>
    %c0_45 = arith.constant 0 : index
    %c0_46 = arith.constant 0 : index
    %142 = vector.load %arg5[%c0_45, %c0_46] : memref<16x32xf32, #tpu.memory_space<vmem>>, vector<16x32xf32>
    tpu.vector_store %arg5[%c0_45, %c0_46], %141 {strides = array<i32>} : memref<16x32xf32, #tpu.memory_space<vmem>>, vector<16x32xf32>,
    return
  }
}

</mosaic_0001>

<bundles_post_ra>
// kernel: multi_head_attention.1
= control target key start
LH: loop header
LB: loop body
LE: loop exit
PB: predicated region body
PF: predicated region fallthrough
CT: control target
= control target key end

     0   :  { %10 = vsyncpa [#allocation3], 0  ;;  %s4885_s0 = inlined_call_operand.hbm [shape: f32[16,32], index: 0, kind: input, shape index: {}]   ;;  %s4886_s1 = inlined_call_operand.hbm [shape: f32[16,32], index: 1, kind: input, shape index: {}]   ;;  %s4887_s2 = inlined_call_operand.hbm [shape: f32[16,32], index: 2, kind: input, shape index: {}]   ;;  %s4888_s3 = inlined_call_operand.hbm [shape: f32[4,32,32], index: 3, kind: input, shape index: {}]   ;;  %s4889_s4 = inlined_call_operand.hbm [shape: f32[6,32], index: 4, kind: input, shape index: {}]   ;;  %s4890_s5 = inlined_call_operand.hbm [shape: f32[16,32], index: 5, kind: output, shape index: {}]  }
   0x1   :  { %11 = vsyncpa [#allocation6], 0 }
   0x2   :  { %12 = vsyncpa [#allocation9], 0 }
   0x3   :  { %13 = vsyncpa [#allocation4], 0  ;;  %s31_s20 = sshll.u32 %s4886_s1, 4  ;;  %s4464_s21 = smov [#allocation5]   ;;  %s32_s20 = int_to_ptr.hbm [resolvable:$true] %s31_s20 }
   0x4   :  { %s33_s22 = sshll.u32 %s4464_s21, 4  ;;  %s57_s25 = sshll.u32 %s4888_s3, 4  ;;  %s34_s22 = int_to_ptr.vmem [resolvable:$true] %s33_s22  ;;  %s58_s25 = int_to_ptr.hbm [resolvable:$true] %s57_s25 }
   0x5   :  { %s4465_s26 = smov 128   ;;  %s4466_s27 = smov 8  }
   0x6   :  { %39 = dma.hbm_to_vmem [thread:$0]  %s32_s20, 256, %s34_s22, [#allocation6], %s4465_s26, %s4465_s26, %s4466_s27  }
   0x7   :  { %s4467_s28 = smov [#allocation8]   ;;  %s18_s1 = sshll.u32 %s4885_s0, 4  ;;  %s19_s1 = int_to_ptr.hbm [resolvable:$true] %s18_s1 }
   0x8   :  { %s59_s29 = sshll.u32 %s4467_s28, 4  ;;  %s44_s8 = sshll.u32 %s4887_s2, 4  ;;  %s60_s29 = int_to_ptr.vmem [resolvable:$true] %s59_s29  ;;  %s45_s8 = int_to_ptr.hbm [resolvable:$true] %s44_s8 }
   0x9   :  { %65 = dma.hbm_to_vmem [thread:$0]  %s58_s25, 2048, %s60_s29, [#allocation9], %s4465_s26, %s4465_s26, %s4466_s27  }
   0xa   :  { %s4468_s9 = smov [#allocation2]   ;;  %s4469_s11 = smov [#allocation7]  }
   0xb   :  { %s20_s10 = sshll.u32 %s4468_s9, 4  ;;  %s46_s0 = sshll.u32 %s4469_s11, 4  ;;  %s21_s10 = int_to_ptr.vmem [resolvable:$true] %s20_s10  ;;  %s47_s0 = int_to_ptr.vmem [resolvable:$true] %s46_s0 }
   0xc   :  { %26 = dma.hbm_to_vmem [thread:$0]  %s19_s1, 256, %s21_s10, [#allocation3], %s4465_s26, %s4465_s26, %s4466_s27  }
   0xd   :  { %s71_s14 = sshll.u32 %s4889_s4, 4  ;;  %s4470_s2 = smov [#allocation10]   ;;  %s72_s14 = int_to_ptr.hbm [resolvable:$true] %s71_s14 }
   0xe   :  { %52 = dma.hbm_to_vmem [thread:$0]  %s45_s8, 256, %s47_s0, [#allocation6], %s4465_s26, %s4465_s26, %s4466_s27  }
   0xf   :  { %s73_s15 = sshll.u32 %s4470_s2, 4  ;;  %s74_s15 = int_to_ptr.vmem [resolvable:$true] %s73_s15 }
  0x10   :  { %76 = dma.hbm_to_vmem [thread:$0]  %s72_s14, 128, %s74_s15, [#allocation9]  }
  0x11   :  { %4456 = dma.done.wait [#allocation3], 256  }
  0x12   :  { %4457 = vsyncadd [#allocation3], 4294967040 }
  0x13   :  { %4458 = dma.done.wait [#allocation6], 512  }
  0x14   :  { %4459 = vsyncadd [#allocation6], 4294966784 }
  0x15   :  { %4460 = dma.done.wait [#allocation9], 2176  }
  0x16   :  { %4461 = vsyncadd [#allocation9], 4294965120  ;;  %vm105_vm0 = vcmask 261120   ;;  %v103_v0 = vld [vmem:[#allocation8 + $0x18] sm:$0xff]  ;;  %v102_v1 = vld [vmem:[#allocation8 + $0x10] sm:$0xff]  ;;  %vm793_vm1 = vcmask 64512  }
  0x17   :  { %v101_v2 = vld [vmem:[#allocation8 + $0x8] sm:$0xff]  ;;  %v4533_v3 = vand.u32 4294901760, %v103_v0  ;;  %v4535_v4 = vand.u32 4294901760, %v102_v1  ;;  %v100_v6 = vld [vmem:[#allocation8] sm:$0xff]  ;;  %v99_v7 = vld [vmem:[#allocation2 + $0x8] sm:$0xff]  ;;  %s4471_s4 = smov 120  }
  0x18   :  { %v4537_v5 = vand.u32 4294901760, %v101_v2  ;;  %v98_v8 = vld [vmem:[#allocation2] sm:$0xff]  ;;  %v4539_v9 = vand.u32 4294901760, %v100_v6  ;;  %v110_v10 = vsel %vm105_vm0, %v99_v7, 0  ;;  %v334_v16 = vld [vmem:[#allocation8 + $0x38] sm:$0xff]  ;;  %v332_v33 = vld [vmem:[#allocation8 + $0x28] sm:$0xff] }
  0x19   :  { %v107_v11 = vsel %vm105_vm0, %v98_v8, 0  ;;  %4253 = vmatpush.msra.mxu2 %v4533_v3  ;;  %v162_v12 = vsub.f32 %v103_v0, %v4533_v3  ;;  %v4545_v13 = vand.u32 4294901760, %v110_v10  ;;  %v168_v14 = vsub.f32 %v102_v1, %v4535_v4  ;;  %125 = vmatpush.msra.mxu0 %v4533_v3  ;;  %v333_v23 = vld [vmem:[#allocation8 + $0x30] sm:$0xff]  ;;  %v331_v39 = vld [vmem:[#allocation8 + $0x20] sm:$0xff]  ;;  %v329_v57 = vld [vmem:[#allocation5 + $0x8] sm:$0xff]  ;;  %s4472_s16 = smov 112  }
  0x1a   :  { %v4549_v15 = vsub.f32 %v101_v2, %v4537_v5  ;;  %v4553_v17 = vsub.f32 %v100_v6, %v4539_v9  ;;  %v4555_v18 = vand.u32 4294901760, %v107_v11  ;;  %v4567_v26 = vand.u32 4294901760, %v334_v16  ;;  %v328_v44 = vld [vmem:[#allocation5] sm:$0xff]  ;;  %s4473_s17 = smov 104   ;;  %s4475_s18 = smov [#allocation11]  }
  0x1b   :  { %4254 = vmatpush.msra.mxu2 %v4535_v4  ;;  %v163_v19 = vand.u32 4294901760, %v162_v12  ;;  %v4559_v20 = vsub.f32 %v110_v10, %v4545_v13  ;;  %v169_v21 = vand.u32 4294901760, %v168_v14  ;;  %127 = vmatpush.msra.mxu0 %v4535_v4  ;;  %v4574_v32 = vand.u32 4294901760, %v333_v23  ;;  %s4236_s19 = sshll.u32 %s4475_s18, 4  ;;  %s4238_s22 = sshll.u32 %s4890_s5, 4  ;;  %s4237_s19 = int_to_ptr.vmem [resolvable:$true] %s4236_s19  ;;  %s4239_s22 = int_to_ptr.hbm [resolvable:$true] %s4238_s22 }
  0x1c   :  { %v175_v22 = vand.u32 4294901760, %v4549_v15  ;;  %v181_v24 = vand.u32 4294901760, %v4553_v17  ;;  %v4565_v25 = vsub.f32 %v107_v11, %v4555_v18  ;;  %v4588_v42 = vsub.f32 %v334_v16, %v4567_v26 }
  0x1d   :  { %4255 = vmatpush.msra.mxu2 %v4537_v5  ;;  %v164_v27 = vsub.f32 %v162_v12, %v163_v19  ;;  %v142_v28 = vand.u32 4294901760, %v4559_v20  ;;  %v170_v29 = vsub.f32 %v168_v14, %v169_v21  ;;  %129 = vmatpush.msra.mxu0 %v4537_v5  ;;  %v4590_v43 = vand.u32 4294901760, %v332_v33 }
  0x1e   :  { %v176_v30 = vsub.f32 %v4549_v15, %v175_v22  ;;  %v134_v31 = vand.u32 4294901760, %v4565_v25  ;;  %v182_v37 = vsub.f32 %v4553_v17, %v181_v24  ;;  %v4592_v47 = vand.u32 4294901760, %v331_v39 }
  0x1f   :  { %4256 = vmatpush.msra.mxu2 %v4539_v9  ;;  %v165_v34 = vand.u32 4294901760, %v164_v27  ;;  %v143_v35 = vsub.f32 %v4559_v20, %v142_v28  ;;  %v171_v36 = vand.u32 4294901760, %v170_v29  ;;  %131 = vmatpush.msra.mxu0 %v4539_v9  ;;  %v4595_v48 = vsub.f32 %v333_v23, %v4574_v32 }
  0x20   :  { %v135_v38 = vsub.f32 %v4565_v25, %v134_v31  ;;  %v177_v41 = vand.u32 4294901760, %v176_v30  ;;  %v183_v46 = vand.u32 4294901760, %v182_v37  ;;  %v337_v49 = vsel %vm105_vm0, %v328_v44, 0  ;;  %v558_v30 = vld [vmem:[#allocation7] sm:$0xff] }
  0x21   :  { %208 = vmatpush.msrb.mxu2 %v162_v12  ;;  %277 = vmatpush.msrb.mxu0 %v163_v19  ;;  %v144_v40 = vand.u32 4294901760, %v143_v35  ;;  %v393_v50 = vand.u32 4294901760, %v4588_v42  ;;  %v4601_v51 = vsub.f32 %v332_v33, %v4590_v43  ;;  %v4605_v52 = vand.u32 4294901760, %v337_v49  ;;  %v564_v12 = vld [vmem:[#allocation8 + $0x58] sm:$0xff] }
  0x22   :  { %4257 = vmatpush.msra.mxu3 %v165_v34  ;;  %166 = vmatpush.msra.mxu1 %v165_v34  ;;  %v136_v45 = vand.u32 4294901760, %v135_v38  ;;  %v399_v53 = vand.u32 4294901760, %v4595_v48  ;;  %v410_v54 = vsub.f32 %v331_v39, %v4592_v47  ;;  %v340_v61 = vsel %vm105_vm0, %v329_v57, 0 }
  0x23   :  { %211 = vmatpush.msrb.mxu2 %v168_v14  ;;  %281 = vmatpush.msrb.mxu0 %v169_v21  ;;  %v394_v55 = vsub.f32 %v4588_v42, %v393_v50  ;;  %v405_v56 = vand.u32 4294901760, %v4601_v51  ;;  %v363_v58 = vsub.f32 %v337_v49, %v4605_v52  ;;  %v563_v14 = vld [vmem:[#allocation8 + $0x50] sm:$0xff]  ;;  %v561_v21 = vld [vmem:[#allocation8 + $0x40] sm:$0xff]  ;;  %v567_v34 = vsel %vm105_vm0, %v558_v30, 0 }
  0x24   :  { %145 = vmatmul.f32.vlgmr.msra.gmra.mxu2 %v144_v40  ;;  %4258 = vmatpush.msra.mxu3 %v171_v36  ;;  %v400_v59 = vsub.f32 %v4595_v48, %v399_v53  ;;  %v411_v60 = vand.u32 4294901760, %v410_v54  ;;  %v586_v16 = vand.u32 4294901760, %v563_v14  ;;  %v592_v35 = vand.u32 4294901760, %v567_v34 }
  0x25   :  { %214 = vmatpush.msrb.mxu2 %v4549_v15  ;;  %172 = vmatpush.msra.mxu1 %v171_v36  ;;  %v395_v62 = vand.u32 4294901760, %v394_v55  ;;  %v406_v63 = vsub.f32 %v4601_v51, %v405_v56  ;;  %v364_v0 = vand.u32 4294901760, %v363_v58 }
  0x26   :  { %4259 = vmatpush.msra.mxu3 %v177_v41  ;;  %137 = vmatmul.f32.vlgmr.msra.gmra.mxu0 %v136_v45  ;;  %v401_v1 = vand.u32 4294901760, %v400_v59  ;;  %v412_v2 = vsub.f32 %v410_v54, %v411_v60  ;;  %v628_v19 = vsub.f32 %v563_v14, %v586_v16  ;;  %v593_v38 = vsub.f32 %v567_v34, %v592_v35 }
  0x27   :  { %217 = vmatpush.msrb.mxu2 %v4553_v17  ;;  %178 = vmatpush.msra.mxu1 %v177_v41  ;;  %v562_v17 = vld [vmem:[#allocation8 + $0x48] sm:$0xff] }
  0x28   :  { %4260 = vmatpush.msra.mxu3 %v183_v46  ;;  %285 = vmatpush.msrb.mxu0 %v175_v22  ;;  %v413_v6 = vand.u32 4294901760, %v412_v2  ;;  %v629_v23 = vand.u32 4294901760, %v628_v19  ;;  %v594_v40 = vand.u32 4294901760, %v593_v38 }
  0x29   :  { %355 = vmatpush.msra.mxu2 %v4567_v26  ;;  %190 = vmatmul.f32.vlgmr.msra.gmra.mxu3 %v4545_v13 }
  0x2a   :  { %184 = vmatpush.msra.mxu1 %v183_v46  ;;  %242 = vmatpush.msrb.mxu3 %v4533_v3  ;;  %v630_v27 = vsub.f32 %v628_v19, %v629_v23  ;;  %v595_v41 = vsub.f32 %v593_v38, %v594_v40 }
  0x2b   :  { %186 = vmatmul.f32.vlgmr.msra.gmra.mxu1 %v4555_v18  ;;  %357 = vmatpush.msra.mxu2 %v4574_v32 }
  0x2c   :  { %312 = vmatpush.msrb.mxu1 %v4533_v3  ;;  %220 = vmatmul.f32.vlgmr.msrb.gmra.mxu2 %v4565_v25  ;;  %v370_v3 = vand.u32 4294901760, %v340_v61  ;;  %v590_v25 = vand.u32 4294901760, %v561_v21  ;;  %v596_v44 = vand.u32 4294901760, %v595_v41 }
  0x2d   :  { %244 = vmatpush.msrb.mxu3 %v4535_v4  ;;  %289 = vmatpush.msrb.mxu0 %v181_v24 }
  0x2e   :  { %314 = vmatpush.msrb.mxu1 %v4535_v4  ;;  %359 = vmatpush.msra.mxu2 %v4590_v43  ;;  %v407_v4 = vand.u32 4294901760, %v406_v63  ;;  %v371_v7 = vsub.f32 %v340_v61, %v370_v3  ;;  %v640_v29 = vsub.f32 %v561_v21, %v590_v25 }
  0x2f   :  { %246 = vmatpush.msrb.mxu3 %v4537_v5  ;;  %291 = vmatmul.f32.vlgmr.msrb.gmra.mxu0 %v4555_v18 }
  0x30   :  { %316 = vmatpush.msrb.mxu1 %v4537_v5  ;;  %361 = vmatpush.msra.mxu2 %v4592_v47  ;;  %v365_v5 = vsub.f32 %v363_v58, %v364_v0  ;;  %v641_v33 = vand.u32 4294901760, %v640_v29 }
  0x31   :  { %248 = vmatpush.msrb.mxu3 %v4539_v9  ;;  %438 = vmatpush.msra.mxu0 %v4588_v42  ;;  %v559_v42 = vld [vmem:[#allocation7 + $0x8] sm:$0xff] }
  0x32   :  { %252 = vmatmul.f32.vlgmr.msrb.gmra.mxu3 %v134_v31  ;;  %318 = vmatpush.msrb.mxu1 %v4539_v9  ;;  %v366_v8 = vand.u32 4294901760, %v365_v5  ;;  %v372_v9 = vand.u32 4294901760, %v371_v7  ;;  %v631_v31 = vand.u32 4294901760, %v630_v27  ;;  %v642_v37 = vsub.f32 %v640_v29, %v641_v33 }
  0x33   :  { %396 = vmatpush.msra.mxu3 %v395_v62  ;;  %320 = vmatmul.f32.vlgmr.msrb.gmra.mxu1 %v4555_v18 }
  0x34   :  { %225 = vmatmul.f32.gmra.mxu2 %v4559_v20  ;;  %441 = vmatpush.msra.mxu0 %v4595_v48  ;;  %v373_v10 = vsub.f32 %v371_v7, %v372_v9  ;;  %v588_v20 = vand.u32 4294901760, %v562_v17  ;;  %v643_v39 = vand.u32 4294901760, %v642_v37 }
  0x35   :  { %402 = vmatpush.msra.mxu3 %v401_v1  ;;  %472 = vmatpush.msra.mxu1 %v4567_v26 }
  0x36   :  { %507 = vmatpush.msrb.mxu2 %v393_v50  ;;  %444 = vmatpush.msra.mxu0 %v4601_v51  ;;  %v374_v11 = vand.u32 4294901760, %v373_v10  ;;  %v634_v24 = vsub.f32 %v562_v17, %v588_v20 }
  0x37   :  { %408 = vmatpush.msra.mxu3 %v407_v4  ;;  %474 = vmatpush.msra.mxu1 %v4574_v32 }
  0x38   :  { %295 = vmatmul.f32.gmra.mxu0 %v4545_v13  ;;  %511 = vmatpush.msrb.mxu2 %v399_v53 }
  0x39   :  { %414 = vmatpush.msra.mxu3 %v413_v6  ;;  %447 = vmatpush.msra.mxu0 %v410_v54 }
  0x3a   :  { %258 = vmatmul.f32.gmra.mxu3 %v142_v28  ;;  %476 = vmatpush.msra.mxu1 %v4590_v43  ;;  %v635_v28 = vand.u32 4294901760, %v634_v24 }
  0x3b   :  { %324 = vmatmul.f32.gmra.mxu1 %v4545_v13  ;;  %515 = vmatpush.msrb.mxu2 %v405_v56  ;;  %v584_v13 = vand.u32 4294901760, %v564_v12 }
  0x3c   :  { %367 = vmatmul.f32.vlgmr.msra.gmra.mxu2 %v366_v8  ;;  %478 = vmatpush.msra.mxu1 %v4592_v47 }
  0x3d   :  { %519 = vmatpush.msrb.mxu2 %v411_v60  ;;  %542 = vmatpush.msrb.mxu3 %v4567_v26  ;;  %v622_v15 = vsub.f32 %v564_v12, %v584_v13 }
  0x3e   :  { %585 = vmatpush.msrb.mxu0 %v584_v13 }
  0x3f   :  { %544 = vmatpush.msrb.mxu3 %v4574_v32  ;;  %v623_v18 = vand.u32 4294901760, %v622_v15  ;;  %668 = vmatpush.msra.mxu2 %v622_v15  ;;  %v636_v32 = vsub.f32 %v634_v24, %v635_v28 }
  0x40   :  { %450 = vmatmul.f32.vlgmr.msra.gmra.mxu0 %v363_v58 }
  0x41   :  { %546 = vmatpush.msrb.mxu3 %v4590_v43  ;;  %587 = vmatpush.msrb.mxu0 %v586_v16  ;;  %v624_v22 = vsub.f32 %v622_v15, %v623_v18  ;;  %v637_v36 = vand.u32 4294901760, %v636_v32  ;;  %v570_v43 = vsel %vm105_vm0, %v559_v42, 0 }
  0x42   :  { %416 = vmatmul.f32.vlgmr.msra.gmra.mxu3 %v4605_v52  ;;  %671 = vmatpush.msra.mxu2 %v628_v19  ;;  %v600_v45 = vand.u32 4294901760, %v570_v43 }
  0x43   :  { %482 = vmatmul.f32.vlgmr.msra.gmra.mxu1 %v364_v0  ;;  %548 = vmatpush.msrb.mxu3 %v4592_v47  ;;  %v625_v26 = vand.u32 4294901760, %v624_v22 }
  0x44   :  { %375 = vmatmul.f32.gmra.mxu2 %v374_v11  ;;  %589 = vmatpush.msrb.mxu0 %v588_v20  ;;  %v601_v46 = vsub.f32 %v570_v43, %v600_v45 }
  0x45   :  { %702 = vmatpush.msra.mxu3 %v584_v13  ;;  %674 = vmatpush.msra.mxu2 %v634_v24 }
  0x46   :  { %591 = vmatpush.msrb.mxu0 %v590_v25  ;;  %626 = vmatpush.msrb.mxu1 %v625_v26  ;;  %v602_v47 = vand.u32 4294901760, %v601_v46 }
  0x47   :  { %704 = vmatpush.msra.mxu3 %v586_v16  ;;  %677 = vmatpush.msra.mxu2 %v640_v29 }
  0x48   :  { %455 = vmatmul.f32.gmra.mxu0 %v371_v7  ;;  %632 = vmatpush.msrb.mxu1 %v631_v31  ;;  %v603_v48 = vsub.f32 %v601_v46, %v602_v47 }
  0x49   :  { %706 = vmatpush.msra.mxu3 %v588_v20  ;;  %737 = vmatpush.msra.mxu0 %v623_v18 }
  0x4a   :  { %420 = vmatmul.f32.gmra.mxu3 %v370_v3  ;;  %638 = vmatpush.msrb.mxu1 %v637_v36  ;;  %v604_v50 = vand.u32 4294901760, %v603_v48 }
  0x4b   :  { %488 = vmatmul.f32.gmra.mxu1 %v372_v9  ;;  %708 = vmatpush.msra.mxu3 %v590_v25 }
  0x4c   :  { %521 = vmatmul.f32.vlgmr.msrb.gmra.mxu2 %v4605_v52  ;;  %741 = vmatpush.msra.mxu0 %v629_v23 }
  0x4d   :  { %644 = vmatpush.msrb.mxu1 %v643_v39 }
  0x4e   :  { %745 = vmatpush.msra.mxu0 %v635_v28 }
  0x4f   :  { %772 = vmatpush.msra.mxu1 %v584_v13 }
  0x50   :  { %749 = vmatpush.msra.mxu0 %v641_v33 }
  0x51   :  { %774 = vmatpush.msra.mxu1 %v586_v16  ;;  %597 = vmatmul.f32.vlgmr.msrb.gmra.mxu0 %v596_v44 }
  0x52   :  { %550 = vmatmul.f32.vlgmr.msrb.gmra.mxu3 %v4605_v52  ;;  %v4656_v52 = vld [vmem:[#allocation10] sm:$0x3f] }
  0x53   :  { %646 = vmatmul.f32.vlgmr.msrb.gmra.mxu1 %v592_v35  ;;  %v104_v54 = vperm.slane %v4656_v52, 0  ;;  %v335_v5 = vperm.slane %v4656_v52, 1 }
  0x54   :  { %525 = vmatmul.f32.gmra.mxu2 %v370_v3  ;;  %776 = vmatpush.msra.mxu1 %v588_v20 }
  0x56   :  { %778 = vmatpush.msra.mxu1 %v590_v25 }
  0x59   :  { %605 = vmatmul.f32.gmra.mxu0 %v604_v50 }
  0x5a   :  { %554 = vmatmul.f32.gmra.mxu3 %v370_v3 }
  0x5b   :  { %650 = vmatmul.f32.gmra.mxu1 %v600_v45 }
  0x5c   :  { %680 = vmatmul.f32.vlgmr.msra.gmra.mxu2 %v593_v38 }
  0x61   :  { %751 = vmatmul.f32.vlgmr.msra.gmra.mxu0 %v592_v35 }
  0x62   :  { %712 = vmatmul.f32.vlgmr.msra.gmra.mxu3 %v594_v40 }
  0x63   :  { %780 = vmatmul.f32.vlgmr.msra.gmra.mxu1 %v592_v35 }
  0x64   :  { %685 = vmatmul.f32.gmra.mxu2 %v601_v46 }
  0x69   :  { %755 = vmatmul.f32.gmra.mxu0 %v600_v45 }
  0x6a   :  { %718 = vmatmul.f32.gmra.mxu3 %v602_v47 }
  0x6b   :  { %784 = vmatmul.f32.gmra.mxu1 %v600_v45 }
  0xa3   :  { %v138_v51 = vpop.f32.mrf.mxu0 }
  0xa4   :  { %v139_v57 = vadd.f32 %v138_v51, %v104_v54 }
  0xa7   :  { %v146_v49 = vpop.f32.mrf.mxu2 }
  0xa8   :  { %v187_v55 = vpop.f32.mrf.mxu1  ;;  %v147_v7 = vadd.f32 %v146_v49, %v104_v54 }
  0xa9   :  { %v188_v58 = vadd.f32 %v187_v55, %v139_v57 }
  0xac   :  { %v191_v53 = vpop.f32.mrf.mxu3  ;;  %v292_v60 = vpop.f32.mrf.mxu0 }
  0xad   :  { %v192_v12 = vadd.f32 %v191_v53, %v147_v7 }
  0xaf   :  { %v221_v56 = vpop.f32.mrf.mxu2 }
  0xb0   :  { %v222_v62 = vadd.f32 %v221_v56, %v188_v58  ;;  %v321_v63 = vpop.f32.mrf.mxu1 }
  0xb5   :  { %v253_v59 = vpop.f32.mrf.mxu3  ;;  %v296_v2 = vpop.f32.mrf.mxu0 }
  0xb6   :  { %v254_v0 = vadd.f32 %v253_v59, %v222_v62 }
  0xb7   :  { %v226_v61 = vpop.f32.mrf.mxu2 }
  0xb8   :  { %v293_v4 = vadd.f32 %v292_v60, %v254_v0  ;;  %v325_v6 = vpop.f32.mrf.mxu1  ;;  %v227_v16 = vadd.f32 %v226_v61, %v192_v12  ;;  %v565_v0 = vperm.slane %v4656_v52, 2 }
  0xba   :  { %v4660_v8 = vadd.f32 %v321_v63, %v293_v4 }
  0xbc   :  { %v795_v13 = vsel %vm793_vm1, %v4660_v8, 0 }
  0xbd   :  { %v259_v1 = vpop.f32.mrf.mxu3  ;;  %v451_v14 = vpop.f32.mrf.mxu0  ;;  %v817_v17 = vand.u32 4294901760, %v795_v13 }
  0xbe   :  { %v260_v18 = vadd.f32 %v259_v1, %v227_v16 }
  0xbf   :  { %v368_v3 = vpop.f32.mrf.mxu2  ;;  %v818_v23 = vsub.f32 %v795_v13, %v817_v17 }
  0xc0   :  { %v369_v10 = vadd.f32 %v368_v3, %v335_v5  ;;  %v483_v19 = vpop.f32.mrf.mxu1  ;;  %v297_v25 = vadd.f32 %v296_v2, %v260_v18 }
  0xc1   :  { %v819_v30 = vand.u32 4294901760, %v818_v23 }
  0xc2   :  { %v4664_v31 = vadd.f32 %v325_v6, %v297_v25 }
  0xc3   :  { %v820_v37 = vsub.f32 %v818_v23, %v819_v30 }
  0xc4   :  { %v947_v38 = vsel %vm793_vm1, %v4664_v31, 0 }
  0xc5   :  { %v417_v9 = vpop.f32.mrf.mxu3  ;;  %v456_v28 = vpop.f32.mrf.mxu0  ;;  %v969_v43 = vand.u32 4294901760, %v947_v38  ;;  %v821_v45 = vand.u32 4294901760, %v820_v37 }
  0xc6   :  { %v418_v15 = vadd.f32 %v417_v9, %v369_v10 }
  0xc7   :  { %v376_v11 = vpop.f32.mrf.mxu2  ;;  %v970_v50 = vsub.f32 %v947_v38, %v969_v43 }
  0xc8   :  { %v377_v21 = vadd.f32 %v376_v11, %v335_v5  ;;  %v452_v22 = vadd.f32 %v451_v14, %v418_v15  ;;  %v489_v35 = vpop.f32.mrf.mxu1 }
  0xc9   :  { %v971_v56 = vand.u32 4294901760, %v970_v50 }
  0xca   :  { %v484_v26 = vadd.f32 %v483_v19, %v452_v22 }
  0xcb   :  { %v972_v59 = vsub.f32 %v970_v50, %v971_v56 }
  0xcd   :  { %v421_v20 = vpop.f32.mrf.mxu3  ;;  %v973_v61 = vand.u32 4294901760, %v972_v59 }
  0xce   :  { %v422_v27 = vadd.f32 %v421_v20, %v377_v21  ;;  %v598_v63 = vpop.f32.mrf.mxu0 }
  0xcf   :  { %v522_v24 = vpop.f32.mrf.mxu2  ;;  %v599_v1 = vadd.f32 %v598_v63, %v565_v0 }
  0xd0   :  { %v523_v29 = vadd.f32 %v522_v24, %v484_v26  ;;  %v457_v33 = vadd.f32 %v456_v28, %v422_v27  ;;  %v647_v62 = vpop.f32.mrf.mxu1 }
  0xd1   :  { %v648_v5 = vadd.f32 %v647_v62, %v599_v1 }
  0xd2   :  { %v490_v41 = vadd.f32 %v489_v35, %v457_v33 }
  0xd5   :  { %v551_v32 = vpop.f32.mrf.mxu3 }
  0xd6   :  { %v4666_v34 = vadd.f32 %v551_v32, %v523_v29  ;;  %v606_v4 = vpop.f32.mrf.mxu0 }
  0xd7   :  { %v526_v39 = vpop.f32.mrf.mxu2  ;;  %v607_v13 = vadd.f32 %v606_v4, %v565_v0 }
  0xd8   :  { %1448 = vrot.lane.b32.xlu2 %v4666_v34, %s4471_s4  ;;  %v798_v36 = vsel %vm793_vm1, %v4666_v34, 0  ;;  %v527_v44 = vadd.f32 %v526_v39, %v490_v41  ;;  %v651_v3 = vpop.f32.mrf.mxu1 }
  0xd9   :  { %v815_v40 = vand.u32 4294901760, %v798_v36  ;;  %v652_v16 = vadd.f32 %v651_v3, %v607_v13 }
  0xdb   :  { %816 = vmatpush.xpose.msrb.mxu2 %v815_v40  ;;  %940 = vmatpush.xpose.msrb.mxu1 %v815_v40  ;;  %v842_v42 = vsub.f32 %v798_v36, %v815_v40 }
  0xdd   :  { %v555_v46 = vpop.f32.mrf.mxu3  ;;  %v843_v47 = vand.u32 4294901760, %v842_v42 }
  0xde   :  { %v4674_v48 = vadd.f32 %v555_v46, %v527_v44  ;;  %822 = vmatmul.f32.vlgmr.msrb.gmra.mxu2 %v821_v45  ;;  %942 = vmatmul.f32.vlgmr.msrb.gmra.mxu1 %v817_v17  ;;  %v752_v10 = vpop.f32.mrf.mxu0 }
  0xdf   :  { %869 = vmatpush.xpose.msra.mxu2 %v842_v42  ;;  %918 = vmatpush.xpose.msrb.mxu0 %v843_v47  ;;  %v844_v49 = vsub.f32 %v842_v42, %v843_v47  ;;  %v681_v2 = vpop.f32.mrf.mxu2 }
  0xe0   :  { %1446 = vrot.lane.b32.xlu2 %v4660_v8, %s4471_s4  ;;  %v950_v51 = vsel %vm793_vm1, %v4674_v48, 0  ;;  %v682_v6 = vadd.f32 %v681_v2, %v648_v5  ;;  %v781_v12 = vpop.f32.mrf.mxu1 }
  0xe1   :  { %v845_v53 = vand.u32 4294901760, %v844_v49  ;;  %v967_v54 = vand.u32 4294901760, %v950_v51 }
  0xe2   :  { %920 = vmatmul.f32.vlgmr.msrb.gmra.mxu0 %v817_v17 }
  0xe3   :  { %846 = vmatpush.xpose.msrb.mxu3 %v845_v53  ;;  %968 = vmatpush.xpose.msrb.mxu2 %v967_v54  ;;  %v994_v55 = vsub.f32 %v950_v51, %v967_v54 }
  0xe4   :  { %1044 = vmatpush.xpose.msra.mxu1 %v967_v54 }
  0xe5   :  { %1021 = vmatpush.xpose.msra.mxu0 %v994_v55  ;;  %v995_v57 = vand.u32 4294901760, %v994_v55  ;;  %v713_v7 = vpop.f32.mrf.mxu3 }
  0xe6   :  { %848 = vmatmul.f32.vlgmr.msrb.gmra.mxu3 %v817_v17  ;;  %872 = vmatmul.f32.vlgmr.msra.gmra.mxu2 %v818_v23  ;;  %v714_v9 = vadd.f32 %v713_v7, %v682_v6  ;;  %v756_v23 = vpop.f32.mrf.mxu0 }
  0xe7   :  { %892 = vmatpush.xpose.msra.mxu3 %v815_v40  ;;  %1048 = vmatmul.f32.vlgmr.msra.gmra.mxu1 %v971_v56  ;;  %v996_v58 = vsub.f32 %v994_v55, %v995_v57  ;;  %v686_v52 = vpop.f32.mrf.mxu2 }
  0xe8   :  { %1070 = vmatpush.xpose.msra.mxu2 %v995_v57  ;;  %v753_v11 = vadd.f32 %v752_v10, %v714_v9  ;;  %v687_v18 = vadd.f32 %v686_v52, %v652_v16  ;;  %v785_v26 = vpop.f32.mrf.mxu1 }
  0xe9   :  { %v997_v60 = vand.u32 4294901760, %v996_v58 }
  0xea   :  { %1024 = vmatmul.f32.vlgmr.msra.gmra.mxu0 %v970_v50  ;;  %v4681_v14 = vadd.f32 %v781_v12, %v753_v11 }
  0xeb   :  { %998 = vmatpush.xpose.msrb.mxu3 %v997_v60 }
  0xec   :  { %v1166_v15 = vand.u32 4294901760, %v4681_v14 }
  0xed   :  { %v719_v20 = vpop.f32.mrf.mxu3 }
  0xee   :  { %896 = vmatmul.f32.vlgmr.msra.gmra.mxu3 %v819_v30  ;;  %974 = vmatmul.f32.vlgmr.msrb.gmra.mxu2 %v973_v61  ;;  %v1193_v17 = vsub.f32 %v4681_v14, %v1166_v15  ;;  %v720_v22 = vadd.f32 %v719_v20, %v687_v18 }
  0xef   :  { %1092 = vmatpush.xpose.msra.mxu3 %v967_v54  ;;  %1167 = vmatpush.msrb.mxu0 %v1166_v15 }
  0xf0   :  { %v1194_v19 = vand.u32 4294901760, %v1193_v17  ;;  %1220 = vmatpush.msrb.mxu2 %v1193_v17  ;;  %v757_v25 = vadd.f32 %v756_v23, %v720_v22 }
  0xf2   :  { %v1195_v21 = vsub.f32 %v1193_v17, %v1194_v19  ;;  %1269 = vmatpush.msra.mxu0 %v1194_v19  ;;  %v4685_v27 = vadd.f32 %v785_v26, %v757_v25 }
  0xf4   :  { %v1196_v24 = vand.u32 4294901760, %v1195_v21  ;;  %v4688_v28 = vand.u32 4294901760, %v4685_v27 }
  0xf6   :  { %1000 = vmatmul.f32.vlgmr.msrb.gmra.mxu3 %v969_v43  ;;  %1072 = vmatmul.f32.vlgmr.msra.gmra.mxu2 %v969_v43  ;;  %v4693_v29 = vsub.f32 %v4685_v27, %v4688_v28 }
  0xf7   :  { %1243 = vmatpush.msrb.mxu3 %v1166_v15  ;;  %1197 = vmatpush.msrb.mxu1 %v1196_v24 }
  0xf8   :  { %1316 = vmatpush.msra.mxu2 %v4688_v28  ;;  %v1343_v30 = vand.u32 4294901760, %v4693_v29 }
  0xf9   :  { %1291 = vmatpush.msra.mxu1 %v1166_v15 }
  0xfa   :  { %v1344_v32 = vsub.f32 %v4693_v29, %v1343_v30 }
  0xfc   :  { %v1345_v33 = vand.u32 4294901760, %v1344_v32 }
  0xfe   :  { %1094 = vmatmul.f32.vlgmr.msra.gmra.mxu3 %v969_v43 }
  0xff   :  { %1346 = vmatpush.msra.mxu3 %v1345_v33 }
 0x132   :  { %v1449_v12 = vpop.permute.xlu2 %1448 }
 0x133   :  { %v1452_v16 = vsel %vm793_vm1, %v1449_v12, 0 }
 0x134   :  { %v1469_v20 = vand.u32 4294901760, %v1452_v16 }
 0x136   :  { %v4708_v25 = vsub.f32 %v1452_v16, %v1469_v20 }
 0x15b   :  { %v943_v43 = vpop.f32.mrf.mxu1 }
 0x15f   :  { %v921_v40 = vpop.f32.mrf.mxu0 }
 0x161   :  { %v823_v35 = vpop.f32.mrf.mxu2 }
 0x164   :  { %v1049_v55 = vpop.f32.mrf.mxu1 }
 0x167   :  { %v1025_v53 = vpop.f32.mrf.mxu0 }
 0x169   :  { %v849_v36 = vpop.f32.mrf.mxu3  ;;  %v873_v37 = vpop.f32.mrf.mxu2 }
 0x16a   :  { %v850_v38 = vadd.f32 %v849_v36, %v823_v35 }
 0x16c   :  { %v874_v39 = vadd.f32 %v873_v37, %v850_v38  ;;  %v1497_v38 = vand.u32 4294901760, %v4708_v25 }
 0x171   :  { %v897_v41 = vpop.f32.mrf.mxu3  ;;  %v975_v45 = vpop.f32.mrf.mxu2 }
 0x172   :  { %v898_v42 = vadd.f32 %v897_v41, %v874_v39 }
 0x174   :  { %v922_v44 = vadd.f32 %v921_v40, %v898_v42 }
 0x176   :  { %v944_v46 = vadd.f32 %v943_v43, %v922_v44 }
 0x178   :  { %v1098_v47 = vmul.f32 0.35355338, %v944_v46  ;;  %v1498_v46 = vsub.f32 %v4708_v25, %v1497_v38 }
 0x179   :  { %v1001_v49 = vpop.f32.mrf.mxu3  ;;  %v1073_v57 = vpop.f32.mrf.mxu2 }
 0x17a   :  { %v1002_v50 = vadd.f32 %v1001_v49, %v975_v45  ;;  %v1100_v51 = vsel %vm793_vm1, %v1098_v47, -inf }
 0x17b   :  { %1101 = vmax.xlane.f32.xlu0 %v1100_v51 }
 0x17c   :  { %v1026_v54 = vadd.f32 %v1025_v53, %v1002_v50 }
 0x17e   :  { %v1050_v56 = vadd.f32 %v1049_v55, %v1026_v54 }
 0x180   :  { %v1074_v58 = vadd.f32 %v1073_v57, %v1050_v56  ;;  %v1499_v56 = vand.u32 4294901760, %v1498_v46 }
 0x181   :  { %v1095_v59 = vpop.f32.mrf.mxu3 }
 0x182   :  { %v1096_v60 = vadd.f32 %v1095_v59, %v1074_v58  ;;  %v1447_v59 = vpop.permute.xlu2 %1446 }
 0x184   :  { %v1099_v61 = vmul.f32 0.35355338, %v1096_v60 }
 0x186   :  { %v1103_v62 = vsel %vm793_vm1, %v1099_v61, -inf }
 0x187   :  { %1104 = vmax.xlane.f32.xlu0 %v1103_v62 }
 0x19b   :  { %1602 = vrot.lane.b32.xlu0 %v4674_v48, %s4471_s4 }
 0x1ee   :  { %v1102_v63 = vpop.xlane.xlu0 %1101 }
 0x1ef   :  { %v1106_v0 = vsub.f32 %v1098_v47, %v1102_v63 }
 0x1f1   :  { %v1108_v1 = vmul.f32 1.442695, %v1106_v0 }
 0x1f3   :  { %4273 = vpow2.f32 %v1108_v1 }
 0x1f9   :  { %v4274_v2 = vpop.eup %4273 }
 0x1fa   :  { %v1105_v3 = vpop.xlane.xlu0 %1104  ;;  %v1112_v4 = vsel %vm793_vm1, %v4274_v2, 0.0 }
 0x1fb   :  { %v1107_v5 = vsub.f32 %v1099_v61, %v1105_v3  ;;  %1113 = vadd.xlane.f32.xlu1 %v1112_v4  ;;  %v1450_v61 = vsel %vm793_vm1, %v1447_v59, 0 }
 0x1fd   :  { %v1110_v6 = vmul.f32 1.442695, %v1107_v5 }
 0x1ff   :  { %4275 = vpow2.f32 %v1110_v6 }
 0x205   :  { %v4276_v7 = vpop.eup %4275 }
 0x206   :  { %v1115_v9 = vsel %vm793_vm1, %v4276_v7, 0.0 }
 0x207   :  { %1116 = vadd.xlane.f32.xlu1 %v1115_v9 }
 0x20d   :  { %v1603_v33 = vpop.permute.xlu0 %1602 }
 0x20e   :  { %v1606_v40 = vsel %vm793_vm1, %v1603_v33, 0 }
 0x20f   :  { %v1623_v47 = vand.u32 4294901760, %v1606_v40 }
 0x211   :  { %v1650_v57 = vsub.f32 %v1606_v40, %v1623_v47 }
 0x213   :  { %v1651_v62 = vand.u32 4294901760, %v1650_v57 }
 0x215   :  { %v1652_v1 = vsub.f32 %v1650_v57, %v1651_v62 }
 0x217   :  { %v1653_v4 = vand.u32 4294901760, %v1652_v1 }
 0x220   :  { %1600 = vrot.lane.b32.xlu1 %v4664_v31, %s4471_s4 }
 0x26e   :  { %v1114_v10 = vpop.xlane.xlu1 %1113 }
 0x26f   :  { %4277 = vrcp.f32 %v1114_v10  ;;  %v1129_v52 = vand.u32 2147483648, %v1114_v10  ;;  %v1127_v18 = vand.u32 2147483647, %v1114_v10  ;;  %vm1123_vm3 = vweird.f32 %v1114_v10 }
 0x271   :  { %v1130_v22 = vor.u32 1.1754944e-38, %v1129_v52  ;;  %vm1128_vm5 = vcmp.eq.f32.partialorder %v1127_v18, 8.507059e+37 }
 0x275   :  { %v4278_v11 = vpop.eup %4277 }
 0x276   :  { %v1119_v13 = vmul.f32 %v4278_v11, %v1114_v10  ;;  %vm1124_vm2 = vweird.f32 %v4278_v11 }
 0x277   :  { %vm1125_vm4 = vmor %vm1123_vm3, %vm1124_vm2 }
 0x278   :  { %v1120_v15 = vsub.f32 1.0, %v1119_v13 }
 0x27a   :  { %v1121_v17 = vmul.f32 %v4278_v11, %v1120_v15  ;;  %v1117_v19 = vpop.xlane.xlu1 %1116 }
 0x27b   :  { %4279 = vrcp.f32 %v1117_v19  ;;  %v1144_v41 = vand.u32 2147483648, %v1117_v19  ;;  %v1142_v44 = vand.u32 2147483647, %v1117_v19  ;;  %vm1138_vm7 = vweird.f32 %v1117_v19 }
 0x27c   :  { %v1122_v21 = vadd.f32 %v4278_v11, %v1121_v17 }
 0x27d   :  { %v1145_v50 = vor.u32 1.1754944e-38, %v1144_v41  ;;  %vm1143_vm9 = vcmp.eq.f32.partialorder %v1142_v44, 8.507059e+37 }
 0x27e   :  { %v1126_v23 = vsel %vm1125_vm4, %v4278_v11, %v1122_v21 }
 0x27f   :  { %v1131_v24 = vsel %vm1128_vm5, %v1130_v22, %v1126_v23 }
 0x280   :  { %v1132_v26 = vmul.f32 %v4274_v2, %v1131_v24 }
 0x281   :  { %v4280_v32 = vpop.eup %4279 }
 0x282   :  { %v1134_v35 = vmul.f32 %v4280_v32, %v1117_v19  ;;  %v1149_v36 = vsel %vm793_vm1, %v1132_v26, 0  ;;  %vm1139_vm6 = vweird.f32 %v4280_v32 }
 0x283   :  { %v1168_v37 = vand.u32 4294901760, %v1149_v36  ;;  %vm1140_vm8 = vmor %vm1138_vm7, %vm1139_vm6 }
 0x284   :  { %v1135_v39 = vsub.f32 1.0, %v1134_v35 }
 0x285   :  { %1199 = vmatmul.f32.vlgmr.msrb.gmra.mxu1 %v1168_v37  ;;  %v1169_v42 = vsub.f32 %v1149_v36, %v1168_v37 }
 0x286   :  { %v1136_v43 = vmul.f32 %v4280_v32, %v1135_v39  ;;  %1392 = vmatpush.msrb.mxu1 %v4688_v28 }
 0x287   :  { %1223 = vmatmul.f32.vlgmr.msrb.gmra.mxu2 %v1169_v42  ;;  %v1170_v45 = vand.u32 4294901760, %v1169_v42 }
 0x288   :  { %v1137_v49 = vadd.f32 %v4280_v32, %v1136_v43  ;;  %1418 = vmatpush.msrb.mxu2 %v1343_v30 }
 0x289   :  { %1247 = vmatmul.f32.vlgmr.msrb.gmra.mxu3 %v1170_v45  ;;  %v1171_v51 = vsub.f32 %v1169_v42, %v1170_v45 }
 0x28a   :  { %v1141_v53 = vsel %vm1140_vm8, %v4280_v32, %v1137_v49  ;;  %1440 = vmatpush.msrb.mxu3 %v4688_v28  ;;  %v1471_v28 = vand.u32 4294901760, %v1450_v61 }
 0x28b   :  { %v1146_v54 = vsel %vm1143_vm9, %v1145_v50, %v1141_v53  ;;  %v1172_v55 = vand.u32 4294901760, %v1171_v51 }
 0x28c   :  { %v1147_v58 = vmul.f32 %v4276_v7, %v1146_v54  ;;  %v1472_v3 = vsub.f32 %v1450_v61, %v1471_v28 }
 0x28d   :  { %1173 = vmatmul.f32.vlgmr.msrb.gmra.mxu0 %v1172_v55  ;;  %1293 = vmatmul.f32.vlgmr.msra.gmra.mxu1 %v1168_v37 }
 0x28e   :  { %1369 = vmatpush.msrb.mxu0 %v4693_v29  ;;  %1500 = vmatpush.xpose.msra.mxu1 %v1499_v56  ;;  %v1298_v30 = vsel %vm793_vm1, %v1147_v58, 0  ;;  %v1473_v6 = vand.u32 4294901760, %v1472_v3 }
 0x28f   :  { %v1317_v60 = vand.u32 4294901760, %v1298_v30 }
 0x290   :  { %v1474_v9 = vsub.f32 %v1472_v3, %v1473_v6 }
 0x291   :  { %v1318_v63 = vsub.f32 %v1298_v30, %v1317_v60  ;;  %1348 = vmatmul.f32.vlgmr.msra.gmra.mxu3 %v1317_v60 }
 0x292   :  { %1546 = vmatpush.xpose.msra.mxu3 %v1469_v20  ;;  %v1601_v5 = vpop.permute.xlu1 %1600  ;;  %v1475_v11 = vand.u32 4294901760, %v1474_v9 }
 0x293   :  { %v1319_v0 = vand.u32 4294901760, %v1318_v63  ;;  %v1604_v7 = vsel %vm793_vm1, %v1601_v5, 0 }
 0x294   :  { %v1625_v10 = vand.u32 4294901760, %v1604_v7 }
 0x295   :  { %1271 = vmatmul.f32.vlgmr.msra.gmra.mxu0 %v1168_v37  ;;  %1396 = vmatmul.f32.vlgmr.msrb.gmra.mxu1 %v1319_v0  ;;  %v1320_v2 = vsub.f32 %v1318_v63, %v1319_v0 }
 0x296   :  { %1470 = vmatpush.xpose.msra.mxu0 %v1469_v20  ;;  %1594 = vmatpush.xpose.msrb.mxu1 %v1469_v20  ;;  %v1626_v12 = vsub.f32 %v1604_v7, %v1625_v10 }
 0x297   :  { %v1321_v29 = vand.u32 4294901760, %v1320_v2 }
 0x298   :  { %v1627_v13 = vand.u32 4294901760, %v1626_v12 }
 0x299   :  { %1322 = vmatmul.f32.vlgmr.msra.gmra.mxu2 %v1321_v29  ;;  %1442 = vmatmul.f32.vlgmr.msrb.gmra.mxu3 %v1317_v60 }
 0x29a   :  { %1523 = vmatpush.xpose.msra.mxu2 %v4708_v25  ;;  %1654 = vmatpush.xpose.msrb.mxu3 %v1653_v4  ;;  %v1628_v15 = vsub.f32 %v1626_v12, %v1627_v13 }
 0x29c   :  { %v1629_v16 = vand.u32 4294901760, %v1628_v15 }
 0x29d   :  { %1372 = vmatmul.f32.vlgmr.msrb.gmra.mxu0 %v1318_v63  ;;  %1502 = vmatmul.f32.vlgmr.msra.gmra.mxu1 %v1471_v28 }
 0x29e   :  { %1572 = vmatpush.xpose.msrb.mxu0 %v1497_v38  ;;  %1700 = vmatpush.xpose.msra.mxu1 %v1623_v47 }
 0x2a1   :  { %1420 = vmatmul.f32.vlgmr.msrb.gmra.mxu2 %v1317_v60  ;;  %1550 = vmatmul.f32.vlgmr.msra.gmra.mxu3 %v1473_v6 }
 0x2a2   :  { %1624 = vmatpush.xpose.msrb.mxu2 %v1623_v47  ;;  %1748 = vmatpush.xpose.msra.mxu3 %v1623_v47 }
 0x2a5   :  { %1476 = vmatmul.f32.vlgmr.msra.gmra.mxu0 %v1475_v11  ;;  %1596 = vmatmul.f32.vlgmr.msrb.gmra.mxu1 %v1471_v28 }
 0x2a6   :  { %1677 = vmatpush.xpose.msra.mxu0 %v1650_v57 }
 0x2a9   :  { %1526 = vmatmul.f32.vlgmr.msra.gmra.mxu2 %v1472_v3  ;;  %1656 = vmatmul.f32.vlgmr.msrb.gmra.mxu3 %v1625_v10 }
 0x2aa   :  { %1726 = vmatpush.xpose.msra.mxu2 %v1651_v62 }
 0x2ad   :  { %1574 = vmatmul.f32.vlgmr.msrb.gmra.mxu0 %v1471_v28  ;;  %1704 = vmatmul.f32.vlgmr.msra.gmra.mxu1 %v1627_v13 }
 0x2b1   :  { %1630 = vmatmul.f32.vlgmr.msrb.gmra.mxu2 %v1629_v16  ;;  %1750 = vmatmul.f32.vlgmr.msra.gmra.mxu3 %v1625_v10 }
 0x2b5   :  { %1680 = vmatmul.f32.vlgmr.msra.gmra.mxu0 %v1626_v12 }
 0x2b9   :  { %1728 = vmatmul.f32.vlgmr.msra.gmra.mxu2 %v1625_v10 }
 0x302   :  { %v4723_v52 = vpop.f32.mrf.mxu1 }
 0x30a   :  { %v4725_v17 = vpop.f32.mrf.mxu0  ;;  %v4729_v19 = vpop.f32.mrf.mxu1 }
 0x30b   :  { %v4733_v21 = vpop.f32.mrf.mxu2 }
 0x30c   :  { %v4727_v18 = vpop.f32.mrf.mxu3 }
 0x312   :  { %v4731_v20 = vpop.f32.mrf.mxu0  ;;  %v4739_v24 = vpop.f32.mrf.mxu1 }
 0x314   :  { %v4735_v22 = vpop.f32.mrf.mxu3 }
 0x31a   :  { %v4737_v23 = vpop.f32.mrf.mxu0  ;;  %v1503_v35 = vpop.f32.mrf.mxu1 }
 0x31c   :  { %v4741_v25 = vpop.f32.mrf.mxu2  ;;  %v4743_v26 = vpop.f32.mrf.mxu3 }
 0x322   :  { %v1477_v32 = vpop.f32.mrf.mxu0  ;;  %v1597_v42 = vpop.f32.mrf.mxu1 }
 0x323   :  { %v1504_v37 = vadd.f32 %v1503_v35, %v1477_v32 }
 0x324   :  { %v4745_v33 = vpop.f32.mrf.mxu2  ;;  %v1551_v36 = vpop.f32.mrf.mxu3 }
 0x32a   :  { %v1575_v38 = vpop.f32.mrf.mxu0  ;;  %v1705_v54 = vpop.f32.mrf.mxu1 }
 0x32c   :  { %v1527_v39 = vpop.f32.mrf.mxu2  ;;  %v1657_v45 = vpop.f32.mrf.mxu3 }
 0x32d   :  { %v1528_v40 = vadd.f32 %v1527_v39, %v1504_v37 }
 0x32f   :  { %v1552_v41 = vadd.f32 %v1551_v36, %v1528_v40 }
 0x331   :  { %v1576_v43 = vadd.f32 %v1575_v38, %v1552_v41 }
 0x332   :  { %v1681_v50 = vpop.f32.mrf.mxu0 }
 0x333   :  { %v1598_v44 = vadd.f32 %v1597_v42, %v1576_v43 }
 0x334   :  { %v1631_v46 = vpop.f32.mrf.mxu2  ;;  %v1751_v58 = vpop.f32.mrf.mxu3 }
 0x335   :  { %v1658_v47 = vadd.f32 %v1657_v45, %v1631_v46  ;;  %v1754_v49 = vmul.f32 0.35355338, %v1598_v44 }
 0x337   :  { %v1682_v51 = vadd.f32 %v1681_v50, %v1658_v47  ;;  %v1756_v53 = vsel %vm793_vm1, %v1754_v49, -inf }
 0x338   :  { %1757 = vmax.xlane.f32.xlu2 %v1756_v53 }
 0x339   :  { %v1706_v55 = vadd.f32 %v1705_v54, %v1682_v51 }
 0x33c   :  { %v1729_v56 = vpop.f32.mrf.mxu2 }
 0x33d   :  { %v1730_v57 = vadd.f32 %v1729_v56, %v1706_v55 }
 0x33f   :  { %v1752_v59 = vadd.f32 %v1751_v58, %v1730_v57 }
 0x341   :  { %v1755_v30 = vmul.f32 0.35355338, %v1752_v59 }
 0x343   :  { %v1759_v60 = vsel %vm793_vm1, %v1755_v30, -inf }
 0x344   :  { %1760 = vmax.xlane.f32.xlu0 %v1759_v60 }
 0x358   :  { %1958 = vrot.lane.b32.xlu0 %v4685_v27, %s4471_s4 }
 0x360   :  { %2630 = vrot.lane.b32.xlu0 %v4664_v31, %s4472_s16 }
 0x3ab   :  { %v1758_v61 = vpop.xlane.xlu2 %1757 }
 0x3ac   :  { %v1762_v62 = vsub.f32 %v1754_v49, %v1758_v61 }
 0x3ae   :  { %v1764_v63 = vmul.f32 1.442695, %v1762_v62 }
 0x3b0   :  { %4281 = vpow2.f32 %v1764_v63 }
 0x3b6   :  { %v4282_v28 = vpop.eup %4281 }
 0x3b7   :  { %v1761_v0 = vpop.xlane.xlu0 %1760  ;;  %v1768_v1 = vsel %vm793_vm1, %v4282_v28, 0.0 }
 0x3b8   :  { %v1763_v2 = vsub.f32 %v1755_v30, %v1761_v0  ;;  %1769 = vadd.xlane.f32.xlu1 %v1768_v1 }
 0x3ba   :  { %v1766_v3 = vmul.f32 1.442695, %v1763_v2 }
 0x3bc   :  { %4283 = vpow2.f32 %v1766_v3 }
 0x3c2   :  { %v4754_v29 = vpop.eup %4283 }
 0x3c3   :  { %v1771_v4 = vsel %vm793_vm1, %v4754_v29, 0.0 }
 0x3c4   :  { %1772 = vadd.xlane.f32.xlu2 %v1771_v4 }
 0x3ca   :  { %v1959_v6 = vpop.permute.xlu0 %1958 }
 0x3cb   :  { %v4766_v7 = vand.u32 4294901760, %v1959_v6 }
 0x3cd   :  { %v2006_v11 = vsub.f32 %v1959_v6, %v4766_v7 }
 0x3cf   :  { %v2007_v35 = vand.u32 4294901760, %v2006_v11 }
 0x3d1   :  { %2478 = vrot.lane.b32.xlu1 %v4666_v34, %s4472_s16  ;;  %v2008_v40 = vsub.f32 %v2006_v11, %v2007_v35 }
 0x3d3   :  { %v2009_v49 = vand.u32 4294901760, %v2008_v40 }
 0x3dc   :  { %1805 = vrot.lane.b32.xlu2 %v4681_v14, %s4471_s4 }
 0x3e4   :  { %2476 = vrot.lane.b32.xlu2 %v4660_v8, %s4472_s16 }
 0x3ec   :  { %2632 = vrot.lane.b32.xlu2 %v4674_v48, %s4472_s16 }
 0x42b   :  { %v1770_v5 = vpop.xlane.xlu1 %1769 }
 0x42c   :  { %4285 = vrcp.f32 %v1770_v5  ;;  %v1785_v13 = vand.u32 2147483648, %v1770_v5  ;;  %v1783_v16 = vand.u32 2147483647, %v1770_v5  ;;  %vm1779_vm11 = vweird.f32 %v1770_v5 }
 0x42e   :  { %v1786_v37 = vor.u32 1.1754944e-38, %v1785_v13  ;;  %vm1784_vm13 = vcmp.eq.f32.partialorder %v1783_v16, 8.507059e+37 }
 0x432   :  { %v4286_v9 = vpop.eup %4285 }
 0x433   :  { %v1775_v10 = vmul.f32 %v4286_v9, %v1770_v5  ;;  %vm1780_vm10 = vweird.f32 %v4286_v9 }
 0x434   :  { %vm1781_vm12 = vmor %vm1779_vm11, %vm1780_vm10 }
 0x435   :  { %v1776_v12 = vsub.f32 1.0, %v1775_v10 }
 0x437   :  { %v1777_v15 = vmul.f32 %v4286_v9, %v1776_v12  ;;  %v1773_v32 = vpop.xlane.xlu2 %1772 }
 0x438   :  { %4287 = vrcp.f32 %v1773_v32  ;;  %v1800_v51 = vand.u32 2147483648, %v1773_v32  ;;  %v1798_v56 = vand.u32 2147483647, %v1773_v32  ;;  %vm1794_vm15 = vweird.f32 %v1773_v32 }
 0x439   :  { %v1778_v36 = vadd.f32 %v4286_v9, %v1777_v15 }
 0x43a   :  { %v1801_v30 = vor.u32 1.1754944e-38, %v1800_v51  ;;  %vm1799_vm3 = vcmp.eq.f32.partialorder %v1798_v56, 8.507059e+37 }
 0x43b   :  { %v1782_v38 = vsel %vm1781_vm12, %v4286_v9, %v1778_v36  ;;  %v789_v36 = vld [vmem:[#allocation8 + $0x60] sm:$0xff] }
 0x43c   :  { %v1787_v39 = vsel %vm1784_vm13, %v1786_v37, %v1782_v38  ;;  %v2314_v38 = vand.u32 4294901760, %v789_v36 }
 0x43d   :  { %v1788_v41 = vmul.f32 %v4282_v28, %v1787_v39  ;;  %v1201_v39 = vadd.f32 %v4723_v52, %v4725_v17 }
 0x43e   :  { %v4288_v42 = vpop.eup %4287 }
 0x43f   :  { %v1790_v43 = vmul.f32 %v4288_v42, %v1773_v32  ;;  %v1806_v44 = vpop.permute.xlu2 %1805  ;;  %v1809_v45 = vsel %vm793_vm1, %v1788_v41, 0  ;;  %vm1795_vm14 = vweird.f32 %v4288_v42 }
 0x440   :  { %v1826_v46 = vand.u32 4294901760, %v1806_v44  ;;  %v1828_v47 = vand.u32 4294901760, %v1809_v45  ;;  %vm1796_vm2 = vmor %vm1794_vm15, %vm1795_vm14 }
 0x441   :  { %v1791_v50 = vsub.f32 1.0, %v1790_v43 }
 0x442   :  { %v1853_v53 = vsub.f32 %v1806_v44, %v1826_v46  ;;  %1827 = vmatpush.msrb.mxu0 %v1826_v46  ;;  %1903 = vmatpush.msrb.mxu3 %v1826_v46  ;;  %v1829_v54 = vsub.f32 %v1809_v45, %v1828_v47  ;;  %v1225_v45 = vadd.f32 %v4733_v21, %v1201_v39 }
 0x443   :  { %v1792_v55 = vmul.f32 %v4288_v42, %v1791_v50 }
 0x444   :  { %2010 = vmatpush.msra.mxu3 %v2009_v49  ;;  %v1854_v57 = vand.u32 4294901760, %v1853_v53  ;;  %1880 = vmatpush.msrb.mxu2 %v1853_v53  ;;  %v1830_v58 = vand.u32 4294901760, %v1829_v54 }
 0x445   :  { %v1793_v59 = vadd.f32 %v4288_v42, %v1792_v55  ;;  %1883 = vmatmul.f32.vlgmr.msrb.gmra.mxu2 %v1829_v54 }
 0x446   :  { %v1855_v60 = vsub.f32 %v1853_v53, %v1854_v57  ;;  %1980 = vmatpush.msra.mxu2 %v4766_v7  ;;  %1907 = vmatmul.f32.vlgmr.msrb.gmra.mxu3 %v1830_v58  ;;  %v1831_v61 = vsub.f32 %v1829_v54, %v1830_v58  ;;  %v1249_v53 = vadd.f32 %v4727_v18, %v1225_v45 }
 0x447   :  { %v1797_v62 = vsel %vm1796_vm2, %v4288_v42, %v1793_v59  ;;  %1929 = vmatpush.msra.mxu0 %v1854_v57  ;;  %2104 = vmatpush.msrb.mxu3 %v4766_v7  ;;  %v2349_v42 = vsub.f32 %v789_v36, %v2314_v38  ;;  %v1350_v54 = vadd.f32 %v4735_v22, %v4741_v25  ;;  %v2479_v25 = vpop.permute.xlu1 %2478 }
 0x448   :  { %2082 = vmatpush.msrb.mxu2 %v2007_v35  ;;  %v1802_v63 = vsel %vm1799_vm3, %v1801_v30, %v1797_v62  ;;  %v1856_v28 = vand.u32 4294901760, %v1855_v60  ;;  %v1832_v0 = vand.u32 4294901760, %v1831_v61  ;;  %v1273_v55 = vadd.f32 %v4731_v20, %v1249_v53 }
 0x449   :  { %v1803_v1 = vmul.f32 %v4754_v29, %v1802_v63  ;;  %v790_v29 = vld [vmem:[#allocation8 + $0x68] sm:$0xff]  ;;  %v2350_v44 = vand.u32 4294901760, %v2349_v42  ;;  %v1374_v21 = vadd.f32 %v4737_v23, %v1350_v54  ;;  %v2482_v62 = vsel %vm793_vm1, %v2479_v25, 0 }
 0x44a   :  { %1833 = vmatmul.f32.vlgmr.msrb.gmra.mxu0 %v1832_v0  ;;  %1857 = vmatpush.msrb.mxu1 %v1856_v28  ;;  %v2131_v10 = vand.u32 4294901760, %v790_v29  ;;  %v1295_v22 = vadd.f32 %v4729_v19, %v1273_v55  ;;  %v2499_v19 = vand.u32 4294901760, %v2482_v62 }
 0x44b   :  { %2033 = vmatpush.msrb.mxu0 %v2006_v11  ;;  %1859 = vmatmul.f32.vlgmr.msrb.gmra.mxu1 %v1828_v47  ;;  %v1962_v2 = vsel %vm793_vm1, %v1803_v1, 0  ;;  %v2351_v49 = vsub.f32 %v2349_v42, %v2350_v44  ;;  %v1398_v20 = vadd.f32 %v4739_v24, %v1374_v21 }
 0x44c   :  { %1951 = vmatpush.msra.mxu1 %v1826_v46  ;;  %v1981_v3 = vand.u32 4294901760, %v1962_v2  ;;  %v2166_v11 = vsub.f32 %v790_v29, %v2131_v10  ;;  %v2294_v63 = vsel %vm793_vm1, %v1295_v22, 0 }
 0x44d   :  { %v2352_v51 = vand.u32 4294901760, %v2351_v49  ;;  %v1422_v28 = vadd.f32 %v4745_v33, %v1398_v20 }
 0x44e   :  { %2056 = vmatpush.msrb.mxu1 %v4766_v7  ;;  %v1982_v4 = vsub.f32 %v1962_v2, %v1981_v3  ;;  %2012 = vmatmul.f32.vlgmr.msra.gmra.mxu3 %v1981_v3  ;;  %v2167_v12 = vand.u32 4294901760, %v2166_v11  ;;  %v2316_v2 = vand.u32 4294901760, %v2294_v63 }
 0x44f   :  { %2225 = vmatpush.msra.mxu3 %v2131_v10 }
 0x450   :  { %v1983_v5 = vand.u32 4294901760, %v1982_v4  ;;  %v2168_v7 = vsub.f32 %v2166_v11, %v2167_v12 }
 0x452   :  { %1931 = vmatmul.f32.vlgmr.msra.gmra.mxu0 %v1828_v47  ;;  %v1984_v6 = vsub.f32 %v1982_v4, %v1983_v5  ;;  %v2169_v13 = vand.u32 4294901760, %v2168_v7 }
 0x453   :  { %1953 = vmatmul.f32.vlgmr.msra.gmra.mxu1 %v1828_v47  ;;  %2132 = vmatpush.msra.mxu0 %v2131_v10 }
 0x454   :  { %v1985_v9 = vand.u32 4294901760, %v1984_v6  ;;  %2170 = vmatpush.msra.mxu1 %v2169_v13  ;;  %v2526_v6 = vsub.f32 %v2482_v62, %v2499_v19 }
 0x456   :  { %1986 = vmatmul.f32.vlgmr.msra.gmra.mxu2 %v1985_v9  ;;  %2106 = vmatmul.f32.vlgmr.msrb.gmra.mxu3 %v1981_v3  ;;  %v2477_v9 = vpop.permute.xlu2 %2476  ;;  %v2527_v7 = vand.u32 4294901760, %v2526_v6 }
 0x457   :  { %2197 = vmatpush.msra.mxu2 %v2166_v11  ;;  %2353 = vmatpush.msrb.mxu3 %v2352_v51  ;;  %v2631_v51 = vpop.permute.xlu0 %2630  ;;  %v2480_v53 = vsel %vm793_vm1, %v2477_v9, 0 }
 0x45a   :  { %2036 = vmatmul.f32.vlgmr.msrb.gmra.mxu0 %v1982_v4  ;;  %v1444_v4 = vadd.f32 %v4743_v26, %v1422_v28 }
 0x45b   :  { %2060 = vmatmul.f32.vlgmr.msrb.gmra.mxu1 %v1983_v5  ;;  %2257 = vmatpush.msrb.mxu0 %v2167_v12 }
 0x45c   :  { %2283 = vmatpush.msrb.mxu1 %v2131_v10  ;;  %v2317_v10 = vsub.f32 %v2294_v63, %v2316_v2  ;;  %v2297_v11 = vsel %vm793_vm1, %v1444_v4, 0 }
 0x45e   :  { %2084 = vmatmul.f32.vlgmr.msrb.gmra.mxu2 %v1981_v3  ;;  %v2318_v13 = vand.u32 4294901760, %v2317_v10 }
 0x45f   :  { %2315 = vmatpush.msrb.mxu2 %v2314_v38 }
 0x460   :  { %v2319_v26 = vsub.f32 %v2317_v10, %v2318_v13 }
 0x4c7   :  { %v1834_v15 = vpop.f32.mrf.mxu0 }
 0x4c8   :  { %v1860_v16 = vpop.f32.mrf.mxu1  ;;  %v1884_v35 = vpop.f32.mrf.mxu2 }
 0x4c9   :  { %v1861_v32 = vadd.f32 %v1860_v16, %v1834_v15  ;;  %v1908_v40 = vpop.f32.mrf.mxu3  ;;  %v2324_v15 = vand.u32 4294901760, %v2297_v11 }
 0x4cb   :  { %v1885_v37 = vadd.f32 %v1884_v35, %v1861_v32  ;;  %v2528_v35 = vsub.f32 %v2526_v6, %v2527_v7  ;;  %v2325_v36 = vsub.f32 %v2297_v11, %v2324_v15 }
 0x4cd   :  { %v1909_v41 = vadd.f32 %v1908_v40, %v1885_v37  ;;  %v2529_v40 = vand.u32 4294901760, %v2528_v35 }
 0x4cf   :  { %v1932_v43 = vpop.f32.mrf.mxu0 }
 0x4d0   :  { %v1933_v46 = vadd.f32 %v1932_v43, %v1909_v41  ;;  %v1954_v47 = vpop.f32.mrf.mxu1  ;;  %v2320_v41 = vand.u32 4294901760, %v2319_v26  ;;  %v2326_v43 = vand.u32 4294901760, %v2325_v36 }
 0x4d1   :  { %v2013_v57 = vpop.f32.mrf.mxu3 }
 0x4d2   :  { %v1955_v50 = vadd.f32 %v1954_v47, %v1933_v46  ;;  %v2327_v45 = vsub.f32 %v2325_v36, %v2326_v43 }
 0x4d4   :  { %v2111_v52 = vsel %vm793_vm1, %v1955_v50, 0  ;;  %v2328_v47 = vand.u32 4294901760, %v2327_v45 }
 0x4d5   :  { %v4782_v17 = vand.u32 4294901760, %v2111_v52 }
 0x4d7   :  { %v2134_v56 = vsub.f32 %v2111_v52, %v4782_v17  ;;  %2172 = vmatmul.f32.vlgmr.msra.gmra.mxu1 %v4782_v17  ;;  %v2037_v30 = vpop.f32.mrf.mxu0  ;;  %v2634_v52 = vsel %vm793_vm1, %v2631_v51, 0 }
 0x4d8   :  { %2408 = vmatpush.msra.mxu1 %v2314_v38  ;;  %v2061_v0 = vpop.f32.mrf.mxu1  ;;  %v2655_v55 = vand.u32 4294901760, %v2634_v52 }
 0x4d9   :  { %v1987_v58 = vpop.f32.mrf.mxu2  ;;  %2200 = vmatmul.f32.vlgmr.msra.gmra.mxu2 %v2134_v56  ;;  %v2135_v18 = vand.u32 4294901760, %v2134_v56  ;;  %v2107_v24 = vpop.f32.mrf.mxu3 }
 0x4da   :  { %v2014_v59 = vadd.f32 %v2013_v57, %v1987_v58  ;;  %2440 = vmatpush.msra.mxu2 %v2350_v44  ;;  %v2656_v21 = vsub.f32 %v2634_v52, %v2655_v55 }
 0x4db   :  { %2229 = vmatmul.f32.vlgmr.msra.gmra.mxu3 %v2135_v18  ;;  %v2136_v60 = vsub.f32 %v2134_v56, %v2135_v18 }
 0x4dc   :  { %v2038_v61 = vadd.f32 %v2037_v30, %v2014_v59  ;;  %2466 = vmatpush.msra.mxu3 %v2314_v38  ;;  %v2633_v38 = vpop.permute.xlu2 %2632  ;;  %v2657_v58 = vand.u32 4294901760, %v2656_v21 }
 0x4dd   :  { %v2137_v23 = vand.u32 4294901760, %v2136_v60 }
 0x4de   :  { %v2062_v1 = vadd.f32 %v2061_v0, %v2038_v61  ;;  %v2658_v22 = vsub.f32 %v2656_v21, %v2657_v58 }
 0x4df   :  { %2138 = vmatmul.f32.vlgmr.msra.gmra.mxu0 %v2137_v23 }
 0x4e0   :  { %2380 = vmatpush.msra.mxu0 %v2349_v42  ;;  %v2636_v42 = vsel %vm793_vm1, %v2633_v38, 0  ;;  %v2659_v59 = vand.u32 4294901760, %v2658_v22 }
 0x4e1   :  { %v2085_v3 = vpop.f32.mrf.mxu2  ;;  %v2653_v44 = vand.u32 4294901760, %v2636_v42 }
 0x4e2   :  { %v2086_v5 = vadd.f32 %v2085_v3, %v2062_v1 }
 0x4e3   :  { %v2680_v46 = vsub.f32 %v2636_v42, %v2653_v44 }
 0x4e4   :  { %v2108_v29 = vadd.f32 %v2107_v24, %v2086_v5 }
 0x4e5   :  { %v2681_v49 = vand.u32 4294901760, %v2680_v46 }
 0x4e6   :  { %v2114_v12 = vsel %vm793_vm1, %v2108_v29, 0 }
 0x4e7   :  { %v2141_v33 = vand.u32 4294901760, %v2114_v12  ;;  %v2682_v50 = vsub.f32 %v2680_v46, %v2681_v49 }
 0x4e9   :  { %2176 = vmatmul.f32.gmra.mxu1 %v2141_v33  ;;  %v2142_v16 = vsub.f32 %v2114_v12, %v2141_v33  ;;  %v2683_v54 = vand.u32 4294901760, %v2682_v50 }
 0x4eb   :  { %2205 = vmatmul.f32.gmra.mxu2 %v2142_v16  ;;  %v2143_v32 = vand.u32 4294901760, %v2142_v16 }
 0x4ed   :  { %2235 = vmatmul.f32.gmra.mxu3 %v2143_v32  ;;  %v2144_v37 = vsub.f32 %v2142_v16, %v2143_v32 }
 0x4ef   :  { %v2145_v39 = vand.u32 4294901760, %v2144_v37 }
 0x4f1   :  { %2146 = vmatmul.f32.gmra.mxu0 %v2145_v39  ;;  %2285 = vmatmul.f32.vlgmr.msrb.gmra.mxu1 %v4782_v17 }
 0x4f2   :  { %2530 = vmatpush.xpose.msrb.mxu1 %v2529_v40 }
 0x4f3   :  { %2321 = vmatmul.f32.vlgmr.msrb.gmra.mxu2 %v2320_v41 }
 0x4f4   :  { %2553 = vmatpush.xpose.msrb.mxu2 %v2526_v6 }
 0x4f5   :  { %2355 = vmatmul.f32.vlgmr.msrb.gmra.mxu3 %v2316_v2 }
 0x4f6   :  { %2576 = vmatpush.xpose.msrb.mxu3 %v2499_v19 }
 0x4f9   :  { %2259 = vmatmul.f32.vlgmr.msrb.gmra.mxu0 %v4782_v17  ;;  %2289 = vmatmul.f32.gmra.mxu1 %v2141_v33  ;;  %v2501_v17 = vand.u32 4294901760, %v2480_v53 }
 0x4fa   :  { %2500 = vmatpush.xpose.msrb.mxu0 %v2499_v19 }
 0x4fb   :  { %2329 = vmatmul.f32.gmra.mxu2 %v2328_v47  ;;  %v2502_v56 = vsub.f32 %v2480_v53, %v2501_v17 }
 0x4fd   :  { %2359 = vmatmul.f32.gmra.mxu3 %v2324_v15  ;;  %v2503_v57 = vand.u32 4294901760, %v2502_v56 }
 0x4ff   :  { %v2504_v18 = vsub.f32 %v2502_v56, %v2503_v57 }
 0x501   :  { %2263 = vmatmul.f32.gmra.mxu0 %v2141_v33  ;;  %2412 = vmatmul.f32.vlgmr.msra.gmra.mxu1 %v2318_v13  ;;  %v2505_v25 = vand.u32 4294901760, %v2504_v18 }
 0x502   :  { %2624 = vmatpush.xpose.msra.mxu1 %v2499_v19 }
 0x503   :  { %2442 = vmatmul.f32.vlgmr.msra.gmra.mxu2 %v2316_v2 }
 0x504   :  { %2654 = vmatpush.xpose.msra.mxu2 %v2653_v44 }
 0x505   :  { %2468 = vmatmul.f32.vlgmr.msra.gmra.mxu3 %v2316_v2 }
 0x506   :  { %2684 = vmatpush.xpose.msra.mxu3 %v2683_v54 }
 0x509   :  { %2383 = vmatmul.f32.vlgmr.msra.gmra.mxu0 %v2317_v10  ;;  %2418 = vmatmul.f32.gmra.mxu1 %v2326_v43 }
 0x50a   :  { %2602 = vmatpush.xpose.msra.mxu0 %v2527_v7 }
 0x50b   :  { %2446 = vmatmul.f32.gmra.mxu2 %v2324_v15 }
 0x50d   :  { %2472 = vmatmul.f32.gmra.mxu3 %v2324_v15 }
 0x511   :  { %2388 = vmatmul.f32.gmra.mxu0 %v2325_v36  ;;  %2532 = vmatmul.f32.vlgmr.msrb.gmra.mxu1 %v2501_v17 }
 0x512   :  { %2730 = vmatpush.xpose.msrb.mxu1 %v2653_v44 }
 0x513   :  { %2556 = vmatmul.f32.vlgmr.msrb.gmra.mxu2 %v2502_v56 }
 0x514   :  { %2756 = vmatpush.xpose.msrb.mxu2 %v2681_v49 }
 0x515   :  { %2580 = vmatmul.f32.vlgmr.msrb.gmra.mxu3 %v2503_v57 }
 0x516   :  { %2778 = vmatpush.xpose.msrb.mxu3 %v2653_v44 }
 0x519   :  { %2506 = vmatmul.f32.vlgmr.msrb.gmra.mxu0 %v2505_v25  ;;  %2626 = vmatmul.f32.vlgmr.msra.gmra.mxu1 %v2501_v17 }
 0x51a   :  { %2707 = vmatpush.xpose.msrb.mxu0 %v2680_v46 }
 0x51b   :  { %2660 = vmatmul.f32.vlgmr.msra.gmra.mxu2 %v2659_v59 }
 0x51d   :  { %2686 = vmatmul.f32.vlgmr.msra.gmra.mxu3 %v2655_v55 }
 0x521   :  { %2604 = vmatmul.f32.vlgmr.msra.gmra.mxu0 %v2501_v17  ;;  %2734 = vmatmul.f32.vlgmr.msrb.gmra.mxu1 %v2657_v58 }
 0x523   :  { %2758 = vmatmul.f32.vlgmr.msrb.gmra.mxu2 %v2655_v55 }
 0x525   :  { %2780 = vmatmul.f32.vlgmr.msrb.gmra.mxu3 %v2655_v55 }
 0x529   :  { %2710 = vmatmul.f32.vlgmr.msrb.gmra.mxu0 %v2656_v21 }
 0x554   :  { %v2173_v30 = vpop.f32.mrf.mxu1 }
 0x55c   :  { %v2139_v60 = vpop.f32.mrf.mxu0  ;;  %v2201_v61 = vpop.f32.mrf.mxu2 }
 0x55d   :  { %v2174_v20 = vadd.f32 %v2173_v30, %v2139_v60 }
 0x55e   :  { %v2230_v23 = vpop.f32.mrf.mxu3 }
 0x55f   :  { %v2202_v62 = vadd.f32 %v2201_v61, %v2174_v20 }
 0x561   :  { %v2231_v63 = vadd.f32 %v2230_v23, %v2202_v62 }
 0x566   :  { %v2177_v28 = vpop.f32.mrf.mxu1 }
 0x56e   :  { %v2147_v0 = vpop.f32.mrf.mxu0  ;;  %v2206_v19 = vpop.f32.mrf.mxu2 }
 0x56f   :  { %v2178_v1 = vadd.f32 %v2177_v28, %v2147_v0  ;;  %v2286_v2 = vpop.f32.mrf.mxu1 }
 0x570   :  { %v2236_v3 = vpop.f32.mrf.mxu3 }
 0x571   :  { %v2207_v4 = vadd.f32 %v2206_v19, %v2178_v1 }
 0x573   :  { %v2237_v5 = vadd.f32 %v2236_v3, %v2207_v4 }
 0x576   :  { %v2260_v24 = vpop.f32.mrf.mxu0  ;;  %v2322_v6 = vpop.f32.mrf.mxu2 }
 0x577   :  { %v2261_v9 = vadd.f32 %v2260_v24, %v2231_v63  ;;  %v2290_v29 = vpop.f32.mrf.mxu1 }
 0x578   :  { %v2356_v10 = vpop.f32.mrf.mxu3 }
 0x579   :  { %v2287_v11 = vadd.f32 %v2286_v2, %v2261_v9 }
 0x57b   :  { %v2323_v12 = vadd.f32 %v2322_v6, %v2287_v11 }
 0x57d   :  { %v2357_v33 = vadd.f32 %v2356_v10, %v2323_v12 }
 0x57e   :  { %v2264_v7 = vpop.f32.mrf.mxu0  ;;  %v2330_v13 = vpop.f32.mrf.mxu2 }
 0x57f   :  { %v2265_v15 = vadd.f32 %v2264_v7, %v2237_v5  ;;  %v2413_v16 = vpop.f32.mrf.mxu1 }
 0x580   :  { %v2360_v32 = vpop.f32.mrf.mxu3 }
 0x581   :  { %v2291_v35 = vadd.f32 %v2290_v29, %v2265_v15 }
 0x583   :  { %v2331_v26 = vadd.f32 %v2330_v13, %v2291_v35 }
 0x585   :  { %v2361_v36 = vadd.f32 %v2360_v32, %v2331_v26 }
 0x586   :  { %v2384_v37 = vpop.f32.mrf.mxu0  ;;  %v2443_v38 = vpop.f32.mrf.mxu2 }
 0x587   :  { %v2385_v39 = vadd.f32 %v2384_v37, %v2357_v33  ;;  %v2419_v42 = vpop.f32.mrf.mxu1 }
 0x588   :  { %v2469_v40 = vpop.f32.mrf.mxu3 }
 0x589   :  { %v2414_v41 = vadd.f32 %v2413_v16, %v2385_v39 }
 0x58b   :  { %v2444_v43 = vadd.f32 %v2443_v38, %v2414_v41 }
 0x58d   :  { %v4801_v44 = vadd.f32 %v2469_v40, %v2444_v43 }
 0x58e   :  { %v2389_v45 = vpop.f32.mrf.mxu0  ;;  %v2447_v46 = vpop.f32.mrf.mxu2 }
 0x58f   :  { %v2390_v47 = vadd.f32 %v2389_v45, %v2361_v36  ;;  %v2533_v53 = vpop.f32.mrf.mxu1 }
 0x590   :  { %v2473_v49 = vpop.f32.mrf.mxu3 }
 0x591   :  { %v2420_v50 = vadd.f32 %v2419_v42, %v2390_v47 }
 0x593   :  { %v2448_v51 = vadd.f32 %v2447_v46, %v2420_v50 }
 0x595   :  { %v4803_v54 = vadd.f32 %v2473_v49, %v2448_v51 }
 0x596   :  { %v2507_v52 = vpop.f32.mrf.mxu0  ;;  %v2557_v17 = vpop.f32.mrf.mxu2 }
 0x597   :  { %v2534_v55 = vadd.f32 %v2533_v53, %v2507_v52  ;;  %v2627_v58 = vpop.f32.mrf.mxu1 }
 0x598   :  { %v2581_v56 = vpop.f32.mrf.mxu3 }
 0x599   :  { %v2558_v21 = vadd.f32 %v2557_v17, %v2534_v55 }
 0x59b   :  { %v2582_v57 = vadd.f32 %v2581_v56, %v2558_v21 }
 0x59e   :  { %v2605_v18 = vpop.f32.mrf.mxu0  ;;  %v2661_v25 = vpop.f32.mrf.mxu2 }
 0x59f   :  { %v2606_v22 = vadd.f32 %v2605_v18, %v2582_v57  ;;  %v2735_v63 = vpop.f32.mrf.mxu1 }
 0x5a0   :  { %v2687_v30 = vpop.f32.mrf.mxu3 }
 0x5a1   :  { %v2628_v59 = vadd.f32 %v2627_v58, %v2606_v22  ;;  %v2688_v20 = vadd.f32 %v2687_v30, %v2661_v25 }
 0x5a3   :  { %v2784_v60 = vmul.f32 0.35355338, %v2628_v59 }
 0x5a5   :  { %v2786_v61 = vsel %vm793_vm1, %v2784_v60, -inf }
 0x5a6   :  { %2787 = vmax.xlane.f32.xlu2 %v2786_v61  ;;  %v2711_v62 = vpop.f32.mrf.mxu0  ;;  %v2759_v0 = vpop.f32.mrf.mxu2 }
 0x5a7   :  { %v2712_v23 = vadd.f32 %v2711_v62, %v2688_v20 }
 0x5a8   :  { %v2781_v1 = vpop.f32.mrf.mxu3 }
 0x5a9   :  { %v2736_v28 = vadd.f32 %v2735_v63, %v2712_v23 }
 0x5ab   :  { %v2760_v19 = vadd.f32 %v2759_v0, %v2736_v28 }
 0x5ad   :  { %v2782_v2 = vadd.f32 %v2781_v1, %v2760_v19  ;;  %v791_v19 = vld [vmem:[#allocation8 + $0x70] sm:$0xff] }
 0x5af   :  { %v2785_v3 = vmul.f32 0.35355338, %v2782_v2 }
 0x5b1   :  { %v2789_v4 = vsel %vm793_vm1, %v2785_v3, -inf }
 0x5b2   :  { %2790 = vmax.xlane.f32.xlu0 %v2789_v4  ;;  %v3159_v4 = vand.u32 4294901760, %v791_v19 }
 0x5c6   :  { %2834 = vrot.lane.b32.xlu0 %v4681_v14, %s4472_s16 }
 0x5ce   :  { %3323 = vrot.lane.b32.xlu0 %v4660_v8, %s4473_s17 }
 0x5d6   :  { %3477 = vrot.lane.b32.xlu0 %v4664_v31, %s4473_s17 }
 0x619   :  { %v2788_v5 = vpop.xlane.xlu2 %2787 }
 0x61a   :  { %v2792_v24 = vsub.f32 %v2784_v60, %v2788_v5 }
 0x61c   :  { %v2794_v6 = vmul.f32 1.442695, %v2792_v24 }
 0x61e   :  { %4289 = vpow2.f32 %v2794_v6 }
 0x624   :  { %v4290_v9 = vpop.eup %4289 }
 0x625   :  { %v2791_v29 = vpop.xlane.xlu0 %2790  ;;  %v2798_v10 = vsel %vm793_vm1, %v4290_v9, 0.0 }
 0x626   :  { %v2793_v11 = vsub.f32 %v2785_v3, %v2791_v29  ;;  %2799 = vadd.xlane.f32.xlu1 %v2798_v10  ;;  %v3194_v10 = vsub.f32 %v791_v19, %v3159_v4 }
 0x628   :  { %v2796_v12 = vmul.f32 1.442695, %v2793_v11 }
 0x62a   :  { %4291 = vpow2.f32 %v2796_v12 }
 0x630   :  { %v4814_v33 = vpop.eup %4291 }
 0x631   :  { %v2801_v8 = vsel %vm793_vm1, %v4814_v33, 0.0 }
 0x632   :  { %2802 = vadd.xlane.f32.xlu2 %v2801_v8 }
 0x638   :  { %v2835_v7 = vpop.permute.xlu0 %2834 }
 0x639   :  { %v2855_v31 = vand.u32 4294901760, %v2835_v7 }
 0x63b   :  { %v2882_v13 = vsub.f32 %v2835_v7, %v2855_v31  ;;  %2856 = vmatpush.msra.mxu0 %v2855_v31  ;;  %2932 = vmatpush.msra.mxu3 %v2855_v31 }
 0x63d   :  { %v2883_v15 = vand.u32 4294901760, %v2882_v13  ;;  %2909 = vmatpush.msra.mxu2 %v2882_v13 }
 0x63f   :  { %v2884_v16 = vsub.f32 %v2882_v13, %v2883_v15  ;;  %2986 = vrot.lane.b32.xlu1 %v4685_v27, %s4472_s16  ;;  %2958 = vmatpush.msrb.mxu0 %v2883_v15 }
 0x641   :  { %v2885_v32 = vand.u32 4294901760, %v2884_v16 }
 0x643   :  { %2886 = vmatpush.msra.mxu1 %v2885_v32 }
 0x645   :  { %2980 = vmatpush.msrb.mxu1 %v2855_v31 }
 0x647   :  { %3479 = vrot.lane.b32.xlu1 %v4674_v48, %s4473_s17 }
 0x64a   :  { %3325 = vrot.lane.b32.xlu2 %v4666_v34, %s4473_s17 }
 0x699   :  { %v2800_v35 = vpop.xlane.xlu1 %2799 }
 0x69a   :  { %4293 = vrcp.f32 %v2800_v35  ;;  %v2815_v38 = vand.u32 2147483648, %v2800_v35  ;;  %v2813_v40 = vand.u32 2147483647, %v2800_v35  ;;  %vm2809_vm5 = vweird.f32 %v2800_v35 }
 0x69c   :  { %v2816_v43 = vor.u32 1.1754944e-38, %v2815_v38  ;;  %vm2814_vm7 = vcmp.eq.f32.partialorder %v2813_v40, 8.507059e+37 }
 0x6a0   :  { %v4294_v26 = vpop.eup %4293 }
 0x6a1   :  { %v2805_v36 = vmul.f32 %v4294_v26, %v2800_v35  ;;  %vm2810_vm4 = vweird.f32 %v4294_v26 }
 0x6a2   :  { %vm2811_vm6 = vmor %vm2809_vm5, %vm2810_vm4 }
 0x6a3   :  { %v2806_v37 = vsub.f32 1.0, %v2805_v36 }
 0x6a5   :  { %v2807_v39 = vmul.f32 %v4294_v26, %v2806_v37  ;;  %v2803_v41 = vpop.xlane.xlu2 %2802 }
 0x6a6   :  { %4295 = vrcp.f32 %v2803_v41  ;;  %v2830_v52 = vand.u32 2147483648, %v2803_v41  ;;  %v2828_v56 = vand.u32 2147483647, %v2803_v41  ;;  %vm2824_vm9 = vweird.f32 %v2803_v41 }
 0x6a7   :  { %v2808_v42 = vadd.f32 %v4294_v26, %v2807_v39 }
 0x6a8   :  { %v2831_v25 = vor.u32 1.1754944e-38, %v2830_v52  ;;  %vm2829_vm11 = vcmp.eq.f32.partialorder %v2828_v56, 8.507059e+37 }
 0x6a9   :  { %v2812_v45 = vsel %vm2811_vm6, %v4294_v26, %v2808_v42 }
 0x6aa   :  { %v2817_v48 = vsel %vm2814_vm7, %v2816_v43, %v2812_v45 }
 0x6ab   :  { %v2818_v46 = vmul.f32 %v4290_v9, %v2817_v48 }
 0x6ac   :  { %v4296_v34 = vpop.eup %4295 }
 0x6ad   :  { %v2820_v47 = vmul.f32 %v4296_v34, %v2803_v41  ;;  %v2838_v49 = vsel %vm793_vm1, %v2818_v46, 0  ;;  %v3326_v50 = vpop.permute.xlu2 %3325  ;;  %vm2825_vm8 = vweird.f32 %v4296_v34 }
 0x6ae   :  { %v2857_v51 = vand.u32 4294901760, %v2838_v49  ;;  %v3329_v21 = vsel %vm793_vm1, %v3326_v50, 0  ;;  %vm2826_vm10 = vmor %vm2824_vm9, %vm2825_vm8 }
 0x6af   :  { %v2821_v53 = vsub.f32 1.0, %v2820_v47  ;;  %v4826_v59 = vand.u32 4294901760, %v3329_v21 }
 0x6b0   :  { %2888 = vmatmul.f32.vlgmr.msra.gmra.mxu1 %v2857_v51  ;;  %v2858_v17 = vsub.f32 %v2838_v49, %v2857_v51 }
 0x6b1   :  { %v2822_v55 = vmul.f32 %v4296_v34, %v2821_v53  ;;  %v2987_v57 = vpop.permute.xlu1 %2986  ;;  %v4830_v28 = vsub.f32 %v3329_v21, %v4826_v59 }
 0x6b2   :  { %v3007_v58 = vand.u32 4294901760, %v2987_v57  ;;  %2912 = vmatmul.f32.vlgmr.msra.gmra.mxu2 %v2858_v17  ;;  %v2859_v18 = vand.u32 4294901760, %v2858_v17 }
 0x6b3   :  { %v2823_v22 = vadd.f32 %v4296_v34, %v2822_v55  ;;  %v3374_v5 = vand.u32 4294901760, %v4830_v28 }
 0x6b4   :  { %v3034_v30 = vsub.f32 %v2987_v57, %v3007_v58  ;;  %2936 = vmatmul.f32.vlgmr.msra.gmra.mxu3 %v2859_v18  ;;  %3008 = vmatpush.msrb.mxu2 %v3007_v58  ;;  %v2860_v60 = vsub.f32 %v2858_v17, %v2859_v18 }
 0x6b5   :  { %v2827_v20 = vsel %vm2826_vm10, %v4296_v34, %v2823_v22  ;;  %3084 = vmatpush.msra.mxu1 %v3007_v58  ;;  %v3375_v9 = vsub.f32 %v4830_v28, %v3374_v5  ;;  %v3324_v34 = vpop.permute.xlu0 %3323 }
 0x6b6   :  { %v2832_v61 = vsel %vm2829_vm11, %v2831_v25, %v2827_v20  ;;  %v3035_v62 = vand.u32 4294901760, %v3034_v30  ;;  %v2861_v23 = vand.u32 4294901760, %v2860_v60  ;;  %v3327_v53 = vsel %vm793_vm1, %v3324_v34, 0 }
 0x6b7   :  { %v2833_v63 = vmul.f32 %v4814_v33, %v2832_v61  ;;  %v3376_v12 = vand.u32 4294901760, %v3375_v9  ;;  %v3195_v33 = vand.u32 4294901760, %v3194_v10  ;;  %v3348_v56 = vand.u32 4294901760, %v3327_v53 }
 0x6b8   :  { %v3036_v0 = vsub.f32 %v3034_v30, %v3035_v62  ;;  %2862 = vmatmul.f32.vlgmr.msra.gmra.mxu0 %v2861_v23  ;;  %2982 = vmatmul.f32.vlgmr.msrb.gmra.mxu1 %v2857_v51 }
 0x6b9   :  { %3061 = vmatpush.msra.mxu0 %v3034_v30  ;;  %3110 = vmatpush.msra.mxu2 %v3035_v62  ;;  %v2990_v1 = vsel %vm793_vm1, %v2833_v63, 0  ;;  %v3196_v8 = vsub.f32 %v3194_v10, %v3195_v33  ;;  %v3480_v52 = vpop.permute.xlu1 %3479  ;;  %v3349_v30 = vsub.f32 %v3327_v53, %v3348_v56 }
 0x6ba   :  { %v3037_v2 = vand.u32 4294901760, %v3036_v0  ;;  %v3009_v3 = vand.u32 4294901760, %v2990_v1  ;;  %v3483_v21 = vsel %vm793_vm1, %v3480_v52, 0 }
 0x6bb   :  { %v3197_v7 = vand.u32 4294901760, %v3196_v8  ;;  %v3500_v22 = vand.u32 4294901760, %v3483_v21  ;;  %v3350_v61 = vand.u32 4294901760, %v3349_v30 }
 0x6bc   :  { %3038 = vmatpush.msrb.mxu3 %v3037_v2  ;;  %v3010_v24 = vsub.f32 %v2990_v1, %v3009_v3 }
 0x6bd   :  { %3040 = vmatmul.f32.vlgmr.msrb.gmra.mxu3 %v3009_v3  ;;  %3198 = vmatpush.msrb.mxu1 %v3197_v7  ;;  %v3527_v20 = vsub.f32 %v3483_v21, %v3500_v22  ;;  %v3478_v23 = vpop.permute.xlu0 %3477  ;;  %v3351_v0 = vsub.f32 %v3349_v30, %v3350_v61 }
 0x6be   :  { %3132 = vmatpush.msra.mxu3 %v3007_v58  ;;  %v3011_v6 = vand.u32 4294901760, %v3010_v24  ;;  %v3481_v1 = vsel %vm793_vm1, %v3478_v23, 0 }
 0x6c0   :  { %3253 = vmatpush.msrb.mxu3 %v3159_v4  ;;  %2960 = vmatmul.f32.vlgmr.msrb.gmra.mxu0 %v2857_v51  ;;  %v3012_v29 = vsub.f32 %v3010_v24, %v3011_v6 }
 0x6c1   :  { %3088 = vmatmul.f32.vlgmr.msra.gmra.mxu1 %v3011_v6  ;;  %3160 = vmatpush.msrb.mxu0 %v3159_v4 }
 0x6c2   :  { %v3013_v11 = vand.u32 4294901760, %v3012_v29  ;;  %3311 = vmatpush.msra.mxu1 %v3159_v4  ;;  %v3352_v4 = vand.u32 4294901760, %v3351_v0 }
 0x6c4   :  { %3014 = vmatmul.f32.vlgmr.msrb.gmra.mxu2 %v3013_v11 }
 0x6c5   :  { %3134 = vmatmul.f32.vlgmr.msra.gmra.mxu3 %v3009_v3  ;;  %3225 = vmatpush.msrb.mxu2 %v3194_v10 }
 0x6c6   :  { %3377 = vmatpush.xpose.msra.mxu3 %v3376_v12 }
 0x6c8   :  { %3064 = vmatmul.f32.vlgmr.msra.gmra.mxu0 %v3010_v24 }
 0x6c9   :  { %3285 = vmatpush.msra.mxu0 %v3195_v33 }
 0x6cc   :  { %3112 = vmatmul.f32.vlgmr.msra.gmra.mxu2 %v3009_v3 }
 0x6cd   :  { %3347 = vmatpush.xpose.msra.mxu2 %v4826_v59 }
 0x72d   :  { %v2889_v31 = vpop.f32.mrf.mxu1 }
 0x735   :  { %v2863_v13 = vpop.f32.mrf.mxu0  ;;  %v2913_v16 = vpop.f32.mrf.mxu2 }
 0x736   :  { %v2890_v15 = vadd.f32 %v2889_v31, %v2863_v13  ;;  %v2983_v38 = vpop.f32.mrf.mxu1 }
 0x737   :  { %v2937_v35 = vpop.f32.mrf.mxu3 }
 0x738   :  { %v2914_v32 = vadd.f32 %v2913_v16, %v2890_v15 }
 0x73a   :  { %v2938_v26 = vadd.f32 %v2937_v35, %v2914_v32 }
 0x73d   :  { %v2961_v36 = vpop.f32.mrf.mxu0 }
 0x73e   :  { %v2962_v37 = vadd.f32 %v2961_v36, %v2938_v26  ;;  %v3089_v17 = vpop.f32.mrf.mxu1 }
 0x740   :  { %v2984_v39 = vadd.f32 %v2983_v38, %v2962_v37  ;;  %v3041_v45 = vpop.f32.mrf.mxu3 }
 0x742   :  { %v3139_v40 = vsel %vm793_vm1, %v2984_v39, 0 }
 0x743   :  { %v3161_v41 = vand.u32 4294901760, %v3139_v40 }
 0x745   :  { %v3162_v42 = vsub.f32 %v3139_v40, %v3161_v41  ;;  %3200 = vmatmul.f32.vlgmr.msrb.gmra.mxu1 %v3161_v41  ;;  %v3065_v49 = vpop.f32.mrf.mxu0 }
 0x746   :  { %3471 = vmatpush.xpose.msrb.mxu1 %v4826_v59 }
 0x747   :  { %v3163_v43 = vand.u32 4294901760, %v3162_v42  ;;  %v3015_v48 = vpop.f32.mrf.mxu2  ;;  %3228 = vmatmul.f32.vlgmr.msrb.gmra.mxu2 %v3162_v42 }
 0x748   :  { %v3042_v46 = vadd.f32 %v3041_v45, %v3015_v48  ;;  %3400 = vmatpush.xpose.msrb.mxu2 %v4830_v28  ;;  %v3135_v18 = vpop.f32.mrf.mxu3  ;;  %v3528_v28 = vand.u32 4294901760, %v3527_v20 }
 0x749   :  { %v3164_v47 = vsub.f32 %v3162_v42, %v3163_v43  ;;  %3257 = vmatmul.f32.vlgmr.msrb.gmra.mxu3 %v3163_v43 }
 0x74a   :  { %v3066_v50 = vadd.f32 %v3065_v49, %v3042_v46  ;;  %3423 = vmatpush.xpose.msrb.mxu3 %v4826_v59  ;;  %v3529_v3 = vsub.f32 %v3527_v20, %v3528_v28 }
 0x74b   :  { %v3165_v51 = vand.u32 4294901760, %v3164_v47 }
 0x74c   :  { %v3090_v55 = vadd.f32 %v3089_v17, %v3066_v50  ;;  %v3530_v24 = vand.u32 4294901760, %v3529_v3 }
 0x74d   :  { %3166 = vmatmul.f32.vlgmr.msrb.gmra.mxu0 %v3165_v51 }
 0x74e   :  { %3449 = vmatpush.xpose.msrb.mxu0 %v3374_v5  ;;  %v3502_v5 = vand.u32 4294901760, %v3481_v1 }
 0x74f   :  { %v3113_v57 = vpop.f32.mrf.mxu2 }
 0x750   :  { %v3114_v58 = vadd.f32 %v3113_v57, %v3090_v55  ;;  %v3503_v6 = vsub.f32 %v3481_v1, %v3502_v5 }
 0x752   :  { %v3136_v25 = vadd.f32 %v3135_v18, %v3114_v58  ;;  %v3504_v9 = vand.u32 4294901760, %v3503_v6 }
 0x754   :  { %v3142_v60 = vsel %vm793_vm1, %v3136_v25, 0  ;;  %v3505_v29 = vsub.f32 %v3503_v6, %v3504_v9 }
 0x755   :  { %v3169_v59 = vand.u32 4294901760, %v3142_v60 }
 0x756   :  { %v3506_v10 = vand.u32 4294901760, %v3505_v29 }
 0x757   :  { %3204 = vmatmul.f32.gmra.mxu1 %v3169_v59  ;;  %v3170_v62 = vsub.f32 %v3142_v60, %v3169_v59 }
 0x759   :  { %3233 = vmatmul.f32.gmra.mxu2 %v3170_v62  ;;  %v3171_v63 = vand.u32 4294901760, %v3170_v62 }
 0x75b   :  { %3263 = vmatmul.f32.gmra.mxu3 %v3171_v63  ;;  %v3172_v19 = vsub.f32 %v3170_v62, %v3171_v63 }
 0x75d   :  { %v3173_v2 = vand.u32 4294901760, %v3172_v19 }
 0x75f   :  { %3174 = vmatmul.f32.gmra.mxu0 %v3173_v2  ;;  %3313 = vmatmul.f32.vlgmr.msra.gmra.mxu1 %v3161_v41 }
 0x760   :  { %3577 = vmatpush.xpose.msra.mxu1 %v3500_v22 }
 0x761   :  { %3353 = vmatmul.f32.vlgmr.msra.gmra.mxu2 %v3352_v4 }
 0x762   :  { %3501 = vmatpush.xpose.msra.mxu2 %v3500_v22 }
 0x763   :  { %3379 = vmatmul.f32.vlgmr.msra.gmra.mxu3 %v3348_v56 }
 0x764   :  { %3531 = vmatpush.xpose.msra.mxu3 %v3530_v24 }
 0x767   :  { %3287 = vmatmul.f32.vlgmr.msra.gmra.mxu0 %v3161_v41  ;;  %3317 = vmatmul.f32.gmra.mxu1 %v3169_v59 }
 0x768   :  { %3554 = vmatpush.xpose.msra.mxu0 %v3527_v20 }
 0x769   :  { %3403 = vmatmul.f32.vlgmr.msrb.gmra.mxu2 %v3349_v30 }
 0x76a   :  { %3603 = vmatpush.xpose.msrb.mxu2 %v3528_v28 }
 0x76b   :  { %3427 = vmatmul.f32.vlgmr.msrb.gmra.mxu3 %v3350_v61 }
 0x76c   :  { %3625 = vmatpush.xpose.msrb.mxu3 %v3500_v22 }
 0x76f   :  { %3291 = vmatmul.f32.gmra.mxu0 %v3169_v59  ;;  %3473 = vmatmul.f32.vlgmr.msrb.gmra.mxu1 %v3348_v56 }
 0x771   :  { %3507 = vmatmul.f32.vlgmr.msra.gmra.mxu2 %v3506_v10 }
 0x773   :  { %3533 = vmatmul.f32.vlgmr.msra.gmra.mxu3 %v3502_v5 }
 0x777   :  { %3451 = vmatmul.f32.vlgmr.msrb.gmra.mxu0 %v3348_v56  ;;  %3581 = vmatmul.f32.vlgmr.msra.gmra.mxu1 %v3504_v9 }
 0x779   :  { %3605 = vmatmul.f32.vlgmr.msrb.gmra.mxu2 %v3502_v5 }
 0x77b   :  { %3627 = vmatmul.f32.vlgmr.msrb.gmra.mxu3 %v3502_v5 }
 0x77f   :  { %3557 = vmatmul.f32.vlgmr.msra.gmra.mxu0 %v3503_v6 }
 0x7c2   :  { %v3201_v11 = vpop.f32.mrf.mxu1 }
 0x7ca   :  { %v3167_v12 = vpop.f32.mrf.mxu0  ;;  %v3229_v8 = vpop.f32.mrf.mxu2 }
 0x7cb   :  { %v3202_v33 = vadd.f32 %v3201_v11, %v3167_v12 }
 0x7cc   :  { %v3258_v31 = vpop.f32.mrf.mxu3 }
 0x7cd   :  { %v3230_v7 = vadd.f32 %v3229_v8, %v3202_v33 }
 0x7cf   :  { %v3259_v13 = vadd.f32 %v3258_v31, %v3230_v7 }
 0x7d4   :  { %v3205_v15 = vpop.f32.mrf.mxu1 }
 0x7dc   :  { %v3175_v16 = vpop.f32.mrf.mxu0  ;;  %v3234_v32 = vpop.f32.mrf.mxu2 }
 0x7dd   :  { %v3206_v35 = vadd.f32 %v3205_v15, %v3175_v16  ;;  %v3314_v37 = vpop.f32.mrf.mxu1 }
 0x7de   :  { %v3264_v26 = vpop.f32.mrf.mxu3 }
 0x7df   :  { %v3235_v36 = vadd.f32 %v3234_v32, %v3206_v35 }
 0x7e1   :  { %v3265_v38 = vadd.f32 %v3264_v26, %v3235_v36 }
 0x7e4   :  { %v3288_v39 = vpop.f32.mrf.mxu0  ;;  %v3354_v40 = vpop.f32.mrf.mxu2 }
 0x7e5   :  { %v3289_v41 = vadd.f32 %v3288_v39, %v3259_v13  ;;  %v3318_v48 = vpop.f32.mrf.mxu1 }
 0x7e6   :  { %v3380_v42 = vpop.f32.mrf.mxu3 }
 0x7e7   :  { %v3315_v43 = vadd.f32 %v3314_v37, %v3289_v41  ;;  %v3381_v47 = vadd.f32 %v3380_v42, %v3354_v40 }
 0x7e9   :  { %v4845_v45 = vadd.f32 %v3315_v43, %v4801_v44 }
 0x7ec   :  { %v3292_v46 = vpop.f32.mrf.mxu0  ;;  %v3404_v34 = vpop.f32.mrf.mxu2 }
 0x7ed   :  { %v3293_v49 = vadd.f32 %v3292_v46, %v3265_v38  ;;  %v3405_v53 = vadd.f32 %v3404_v34, %v3381_v47  ;;  %v3474_v55 = vpop.f32.mrf.mxu1 }
 0x7ee   :  { %v3428_v50 = vpop.f32.mrf.mxu3 }
 0x7ef   :  { %v3319_v51 = vadd.f32 %v3318_v48, %v3293_v49  ;;  %v3429_v17 = vadd.f32 %v3428_v50, %v3405_v53 }
 0x7f1   :  { %v4848_v52 = vadd.f32 %v3319_v51, %v4803_v54 }
 0x7f4   :  { %v3452_v56 = vpop.f32.mrf.mxu0  ;;  %v3508_v57 = vpop.f32.mrf.mxu2 }
 0x7f5   :  { %v3453_v21 = vadd.f32 %v3452_v56, %v3429_v17  ;;  %v3582_v59 = vpop.f32.mrf.mxu1 }
 0x7f6   :  { %v3534_v18 = vpop.f32.mrf.mxu3 }
 0x7f7   :  { %v3475_v58 = vadd.f32 %v3474_v55, %v3453_v21  ;;  %v3535_v22 = vadd.f32 %v3534_v18, %v3508_v57 }
 0x7f9   :  { %v3631_v44 = vmul.f32 0.35355338, %v3475_v58 }
 0x7fb   :  { %v3633_v25 = vsel %vm793_vm1, %v3631_v44, -inf }
 0x7fc   :  { %3634 = vmax.xlane.f32.xlu2 %v3633_v25  ;;  %v3558_v30 = vpop.f32.mrf.mxu0  ;;  %v3606_v61 = vpop.f32.mrf.mxu2 }
 0x7fd   :  { %v3559_v60 = vadd.f32 %v3558_v30, %v3535_v22 }
 0x7fe   :  { %v3628_v54 = vpop.f32.mrf.mxu3 }
 0x7ff   :  { %v3583_v20 = vadd.f32 %v3582_v59, %v3559_v60 }
 0x801   :  { %v3607_v62 = vadd.f32 %v3606_v61, %v3583_v20 }
 0x803   :  { %v3629_v23 = vadd.f32 %v3628_v54, %v3607_v62  ;;  %v792_v54 = vld [vmem:[#allocation8 + $0x78] sm:$0xff] }
 0x805   :  { %v3632_v63 = vmul.f32 0.35355338, %v3629_v23  ;;  %v4006_v23 = vand.u32 4294901760, %v792_v54 }
 0x807   :  { %v3636_v28 = vsel %vm793_vm1, %v3632_v63, -inf }
 0x808   :  { %3637 = vmax.xlane.f32.xlu1 %v3636_v28 }
 0x821   :  { %3681 = vrot.lane.b32.xlu1 %v4681_v14, %s4473_s17 }
 0x86f   :  { %v3635_v0 = vpop.xlane.xlu2 %3634 }
 0x870   :  { %v3639_v19 = vsub.f32 %v3631_v44, %v3635_v0 }
 0x872   :  { %v3641_v1 = vmul.f32 1.442695, %v3639_v19 }
 0x874   :  { %4297 = vpow2.f32 %v3641_v1 }
 0x87a   :  { %v4298_v2 = vpop.eup %4297 }
 0x87b   :  { %v3638_v3 = vpop.xlane.xlu1 %3637  ;;  %v3645_v4 = vsel %vm793_vm1, %v4298_v2, 0.0 }
 0x87c   :  { %v3640_v5 = vsub.f32 %v3632_v63, %v3638_v3  ;;  %3646 = vadd.xlane.f32.xlu0 %v3645_v4  ;;  %v4041_v63 = vsub.f32 %v792_v54, %v4006_v23 }
 0x87e   :  { %v3643_v24 = vmul.f32 1.442695, %v3640_v5  ;;  %v4042_v28 = vand.u32 4294901760, %v4041_v63 }
 0x880   :  { %4299 = vpow2.f32 %v3643_v24  ;;  %v4043_v0 = vsub.f32 %v4041_v63, %v4042_v28 }
 0x882   :  { %v4044_v19 = vand.u32 4294901760, %v4043_v0 }
 0x886   :  { %v4855_v6 = vpop.eup %4299 }
 0x887   :  { %v3648_v9 = vsel %vm793_vm1, %v4855_v6, 0.0 }
 0x888   :  { %3649 = vadd.xlane.f32.xlu2 %v3648_v9 }
 0x890   :  { %3833 = vrot.lane.b32.xlu0 %v4685_v27, %s4473_s17 }
 0x893   :  { %v3682_v14 = vpop.permute.xlu1 %3681 }
 0x894   :  { %v3702_v29 = vand.u32 4294901760, %v3682_v14 }
 0x896   :  { %v3729_v10 = vsub.f32 %v3682_v14, %v3702_v29  ;;  %3703 = vmatpush.msrb.mxu0 %v3702_v29  ;;  %3779 = vmatpush.msra.mxu3 %v3702_v29 }
 0x898   :  { %v3730_v11 = vand.u32 4294901760, %v3729_v10  ;;  %3756 = vmatpush.msra.mxu2 %v3729_v10 }
 0x89a   :  { %v3731_v12 = vsub.f32 %v3729_v10, %v3730_v11  ;;  %3805 = vmatpush.msra.mxu0 %v3730_v11 }
 0x89c   :  { %v3732_v33 = vand.u32 4294901760, %v3731_v12 }
 0x89e   :  { %3733 = vmatpush.msrb.mxu1 %v3732_v33 }
 0x8a0   :  { %3827 = vmatpush.msra.mxu1 %v3702_v29 }
 0x8ef   :  { %v3647_v8 = vpop.xlane.xlu0 %3646 }
 0x8f0   :  { %4301 = vrcp.f32 %v3647_v8  ;;  %v3662_v15 = vand.u32 2147483648, %v3647_v8  ;;  %v3660_v27 = vand.u32 2147483647, %v3647_v8  ;;  %vm3656_vm13 = vweird.f32 %v3647_v8 }
 0x8f2   :  { %v3663_v26 = vor.u32 1.1754944e-38, %v3662_v15  ;;  %vm3661_vm15 = vcmp.eq.f32.partialorder %v3660_v27, 8.507059e+37 }
 0x8f6   :  { %v4302_v7 = vpop.eup %4301 }
 0x8f7   :  { %v3652_v31 = vmul.f32 %v4302_v7, %v3647_v8  ;;  %vm3657_vm12 = vweird.f32 %v4302_v7 }
 0x8f8   :  { %vm3658_vm14 = vmor %vm3656_vm13, %vm3657_vm12 }
 0x8f9   :  { %v3653_v13 = vsub.f32 1.0, %v3652_v31 }
 0x8fb   :  { %v3654_v16 = vmul.f32 %v4302_v7, %v3653_v13  ;;  %v3650_v32 = vpop.xlane.xlu2 %3649 }
 0x8fc   :  { %4303 = vrcp.f32 %v3650_v32  ;;  %v3677_v47 = vand.u32 2147483648, %v3650_v32  ;;  %v3675_v51 = vand.u32 2147483647, %v3650_v32  ;;  %vm3671_vm3 = vweird.f32 %v3650_v32 }
 0x8fd   :  { %v3655_v35 = vadd.f32 %v4302_v7, %v3654_v16 }
 0x8fe   :  { %v3678_v21 = vor.u32 1.1754944e-38, %v3677_v47  ;;  %vm3676_vm5 = vcmp.eq.f32.partialorder %v3675_v51, 8.507059e+37 }
 0x8ff   :  { %v3659_v36 = vsel %vm3658_vm14, %v4302_v7, %v3655_v35 }
 0x900   :  { %v3664_v37 = vsel %vm3661_vm15, %v3663_v26, %v3659_v36 }
 0x901   :  { %v3665_v38 = vmul.f32 %v4298_v2, %v3664_v37 }
 0x902   :  { %v4304_v39 = vpop.eup %4303  ;;  %v3834_v40 = vpop.permute.xlu0 %3833 }
 0x903   :  { %v3667_v41 = vmul.f32 %v4304_v39, %v3650_v32  ;;  %v3854_v42 = vand.u32 4294901760, %v3834_v40  ;;  %v3685_v43 = vsel %vm793_vm1, %v3665_v38, 0  ;;  %vm3672_vm2 = vweird.f32 %v4304_v39 }
 0x904   :  { %v3704_v48 = vand.u32 4294901760, %v3685_v43  ;;  %vm3673_vm4 = vmor %vm3671_vm3, %vm3672_vm2 }
 0x905   :  { %v3668_v46 = vsub.f32 1.0, %v3667_v41  ;;  %v3881_v34 = vsub.f32 %v3834_v40, %v3854_v42  ;;  %3855 = vmatpush.msrb.mxu2 %v3854_v42 }
 0x906   :  { %3735 = vmatmul.f32.vlgmr.msrb.gmra.mxu1 %v3704_v48  ;;  %v3705_v49 = vsub.f32 %v3685_v43, %v3704_v48 }
 0x907   :  { %v3669_v50 = vmul.f32 %v4304_v39, %v3668_v46  ;;  %v3882_v53 = vand.u32 4294901760, %v3881_v34  ;;  %3931 = vmatpush.msrb.mxu1 %v3854_v42 }
 0x908   :  { %3759 = vmatmul.f32.vlgmr.msra.gmra.mxu2 %v3705_v49  ;;  %v3706_v17 = vand.u32 4294901760, %v3705_v49 }
 0x909   :  { %v3670_v55 = vadd.f32 %v4304_v39, %v3669_v50  ;;  %v3883_v56 = vsub.f32 %v3881_v34, %v3882_v53  ;;  %3957 = vmatpush.msra.mxu2 %v3882_v53 }
 0x90a   :  { %3783 = vmatmul.f32.vlgmr.msra.gmra.mxu3 %v3706_v17  ;;  %v3707_v57 = vsub.f32 %v3705_v49, %v3706_v17 }
 0x90b   :  { %v3674_v58 = vsel %vm3673_vm4, %v4304_v39, %v3670_v55  ;;  %v3884_v18 = vand.u32 4294901760, %v3883_v56 }
 0x90c   :  { %v3679_v44 = vsel %vm3676_vm5, %v3678_v21, %v3674_v58  ;;  %v3708_v22 = vand.u32 4294901760, %v3707_v57 }
 0x90d   :  { %v3680_v25 = vmul.f32 %v4855_v6, %v3679_v44  ;;  %3885 = vmatpush.msrb.mxu3 %v3884_v18 }
 0x90e   :  { %3709 = vmatmul.f32.vlgmr.msrb.gmra.mxu0 %v3708_v22  ;;  %3829 = vmatmul.f32.vlgmr.msra.gmra.mxu1 %v3704_v48 }
 0x90f   :  { %3908 = vmatpush.msrb.mxu0 %v3881_v34  ;;  %3979 = vmatpush.msra.mxu3 %v3854_v42  ;;  %v3837_v30 = vsel %vm793_vm1, %v3680_v25, 0 }
 0x910   :  { %v3856_v60 = vand.u32 4294901760, %v3837_v30  ;;  %4045 = vmatpush.msra.mxu1 %v4044_v19 }
 0x912   :  { %v3857_v59 = vsub.f32 %v3837_v30, %v3856_v60  ;;  %3887 = vmatmul.f32.vlgmr.msrb.gmra.mxu3 %v3856_v60  ;;  %v4866_v30 = vld [vmem:[#allocation10] sm:$0x3f] }
 0x913   :  { %4100 = vmatpush.msrb.mxu3 %v4006_v23 }
 0x914   :  { %v3858_v20 = vand.u32 4294901760, %v3857_v59 }
 0x916   :  { %3807 = vmatmul.f32.vlgmr.msra.gmra.mxu0 %v3704_v48  ;;  %3935 = vmatmul.f32.vlgmr.msrb.gmra.mxu1 %v3858_v20  ;;  %v3859_v61 = vsub.f32 %v3857_v59, %v3858_v20 }
 0x917   :  { %4007 = vmatpush.msra.mxu0 %v4006_v23  ;;  %4158 = vmatpush.msrb.mxu1 %v4006_v23 }
 0x918   :  { %v3860_v62 = vand.u32 4294901760, %v3859_v61 }
 0x91a   :  { %3861 = vmatmul.f32.vlgmr.msrb.gmra.mxu2 %v3860_v62  ;;  %3981 = vmatmul.f32.vlgmr.msra.gmra.mxu3 %v3856_v60 }
 0x91b   :  { %4072 = vmatpush.msrb.mxu2 %v4041_v63 }
 0x91e   :  { %3911 = vmatmul.f32.vlgmr.msrb.gmra.mxu0 %v3857_v59 }
 0x91f   :  { %4132 = vmatpush.msrb.mxu0 %v4042_v28 }
 0x922   :  { %3959 = vmatmul.f32.vlgmr.msra.gmra.mxu2 %v3856_v60  ;;  %v4170_v60 = vperm.slane %v4866_v30, 3 }
 0x983   :  { %v3736_v1 = vpop.f32.mrf.mxu1 }
 0x98b   :  { %v3710_v2 = vpop.f32.mrf.mxu0  ;;  %v3760_v4 = vpop.f32.mrf.mxu2 }
 0x98c   :  { %v3737_v3 = vadd.f32 %v3736_v1, %v3710_v2  ;;  %v3830_v29 = vpop.f32.mrf.mxu1 }
 0x98d   :  { %v3784_v24 = vpop.f32.mrf.mxu3 }
 0x98e   :  { %v3761_v5 = vadd.f32 %v3760_v4, %v3737_v3  ;;  %v4474_v3 = vmov 32.0  }
 0x98f   :  { %4305 = vrcp.f32 %v4474_v3 }
 0x990   :  { %v3785_v6 = vadd.f32 %v3784_v24, %v3761_v5 }
 0x993   :  { %v3808_v9 = vpop.f32.mrf.mxu0 }
 0x994   :  { %v3809_v14 = vadd.f32 %v3808_v9, %v3785_v6  ;;  %v3936_v35 = vpop.f32.mrf.mxu1 }
 0x995   :  { %v3888_v7 = vpop.f32.mrf.mxu3  ;;  %v4306_v4 = vpop.eup %4305 }
 0x996   :  { %v3831_v10 = vadd.f32 %v3830_v29, %v3809_v14 }
 0x998   :  { %v3986_v11 = vsel %vm793_vm1, %v3831_v10, 0 }
 0x999   :  { %v4008_v12 = vand.u32 4294901760, %v3986_v11 }
 0x99b   :  { %v4009_v33 = vsub.f32 %v3986_v11, %v4008_v12  ;;  %4047 = vmatmul.f32.vlgmr.msra.gmra.mxu1 %v4008_v12  ;;  %v3912_v16 = vpop.f32.mrf.mxu0 }
 0x99d   :  { %v4010_v8 = vand.u32 4294901760, %v4009_v33  ;;  %v3862_v31 = vpop.f32.mrf.mxu2  ;;  %4075 = vmatmul.f32.vlgmr.msrb.gmra.mxu2 %v4009_v33  ;;  %v3982_v38 = vpop.f32.mrf.mxu3 }
 0x99e   :  { %v3889_v13 = vadd.f32 %v3888_v7, %v3862_v31 }
 0x99f   :  { %v4011_v15 = vsub.f32 %v4009_v33, %v4010_v8  ;;  %4104 = vmatmul.f32.vlgmr.msrb.gmra.mxu3 %v4010_v8 }
 0x9a0   :  { %v3913_v27 = vadd.f32 %v3912_v16, %v3889_v13 }
 0x9a1   :  { %v4012_v32 = vand.u32 4294901760, %v4011_v15 }
 0x9a2   :  { %v3937_v26 = vadd.f32 %v3936_v35, %v3913_v27 }
 0x9a3   :  { %4013 = vmatmul.f32.vlgmr.msra.gmra.mxu0 %v4012_v32 }
 0x9a5   :  { %v3960_v36 = vpop.f32.mrf.mxu2 }
 0x9a6   :  { %v3961_v37 = vadd.f32 %v3960_v36, %v3937_v26 }
 0x9a8   :  { %v3983_v39 = vadd.f32 %v3982_v38, %v3961_v37 }
 0x9aa   :  { %v3989_v40 = vsel %vm793_vm1, %v3983_v39, 0  ;;  %vm4184_vm1 = vweird.f32 %v4306_v4 }
 0x9ab   :  { %v4016_v41 = vand.u32 4294901760, %v3989_v40 }
 0x9ad   :  { %4051 = vmatmul.f32.gmra.mxu1 %v4016_v41  ;;  %v4017_v42 = vsub.f32 %v3989_v40, %v4016_v41 }
 0x9af   :  { %4080 = vmatmul.f32.gmra.mxu2 %v4017_v42  ;;  %v4018_v43 = vand.u32 4294901760, %v4017_v42 }
 0x9b1   :  { %4110 = vmatmul.f32.gmra.mxu3 %v4018_v43  ;;  %v4019_v48 = vsub.f32 %v4017_v42, %v4018_v43  ;;  %v4224_v43 = vperm.slane %v4866_v30, 4 }
 0x9b3   :  { %v4020_v46 = vand.u32 4294901760, %v4019_v48 }
 0x9b5   :  { %4021 = vmatmul.f32.gmra.mxu0 %v4020_v46  ;;  %4160 = vmatmul.f32.vlgmr.msrb.gmra.mxu1 %v4008_v12 }
 0x9bd   :  { %4134 = vmatmul.f32.vlgmr.msrb.gmra.mxu0 %v4008_v12  ;;  %4164 = vmatmul.f32.gmra.mxu1 %v4016_v41 }
 0x9c5   :  { %4138 = vmatmul.f32.gmra.mxu0 %v4016_v41 }
 0xa18   :  { %v4048_v34 = vpop.f32.mrf.mxu1 }
 0xa20   :  { %v4014_v47 = vpop.f32.mrf.mxu0  ;;  %v4076_v53 = vpop.f32.mrf.mxu2 }
 0xa21   :  { %v4049_v50 = vadd.f32 %v4048_v34, %v4014_v47  ;;  %v4227_v47 = vperm.slane %v4866_v30, 5 }
 0xa22   :  { %v4105_v55 = vpop.f32.mrf.mxu3 }
 0xa23   :  { %v4077_v17 = vadd.f32 %v4076_v53, %v4049_v50 }
 0xa25   :  { %v4106_v56 = vadd.f32 %v4105_v55, %v4077_v17 }
 0xa2a   :  { %v4052_v49 = vpop.f32.mrf.mxu1 }
 0xa32   :  { %v4022_v51 = vpop.f32.mrf.mxu0  ;;  %v4161_v57 = vpop.f32.mrf.mxu1 }
 0xa33   :  { %v4053_v21 = vadd.f32 %v4052_v49, %v4022_v51  ;;  %v4081_v44 = vpop.f32.mrf.mxu2 }
 0xa34   :  { %v4111_v20 = vpop.f32.mrf.mxu3 }
 0xa35   :  { %v4082_v22 = vadd.f32 %v4081_v44, %v4053_v21 }
 0xa37   :  { %v4112_v61 = vadd.f32 %v4111_v20, %v4082_v22 }
 0xa3a   :  { %v4135_v58 = vpop.f32.mrf.mxu0  ;;  %v4165_v28 = vpop.f32.mrf.mxu1 }
 0xa3b   :  { %v4136_v18 = vadd.f32 %v4135_v58, %v4106_v56 }
 0xa3d   :  { %v4162_v25 = vadd.f32 %v4161_v57, %v4136_v18 }
 0xa3f   :  { %v4168_v59 = vadd.f32 %v4162_v25, %v4845_v45  ;;  %v4180_v45 = vmul.f32 32.0, %v4306_v4 }
 0xa41   :  { %v4171_v62 = vadd.f32 %v4170_v60, %v4168_v59  ;;  %v4181_v5 = vsub.f32 1.0, %v4180_v45 }
 0xa42   :  { %v4139_v54 = vpop.f32.mrf.mxu0 }
 0xa43   :  { %v4140_v23 = vadd.f32 %v4139_v54, %v4112_v61  ;;  %v4173_v63 = vsel %vm105_vm0, %v4171_v62, 0.0  ;;  %v4182_v24 = vmul.f32 %v4306_v4, %v4181_v5 }
 0xa44   :  { %4174 = vadd.xlane.f32.xlu2 %v4173_v63 }
 0xa45   :  { %v4166_v0 = vadd.f32 %v4165_v28, %v4140_v23  ;;  %v4183_v6 = vadd.f32 %v4306_v4, %v4182_v24 }
 0xa47   :  { %v4169_v19 = vadd.f32 %v4166_v0, %v4848_v52  ;;  %v4185_v9 = vsel %vm4184_vm1, %v4306_v4, %v4183_v6 }
 0xa49   :  { %v4172_v1 = vadd.f32 %v4170_v60, %v4169_v19 }
 0xa4b   :  { %v4176_v2 = vsel %vm105_vm0, %v4172_v1, 0.0 }
 0xa4c   :  { %4177 = vadd.xlane.f32.xlu2 %v4176_v2 }
 0xab7   :  { %v4175_v14 = vpop.xlane.xlu2 %4174 }
 0xab8   :  { %v4186_v29 = vmul.f32 %v4185_v9, %v4175_v14 }
 0xaba   :  { %v4188_v10 = vsub.f32 %v4171_v62, %v4186_v29 }
 0xabc   :  { %v4190_v11 = vmul.f32 %v4188_v10, %v4188_v10 }
 0xabe   :  { %v4192_v12 = vsel %vm105_vm0, %v4190_v11, 0.0 }
 0xabf   :  { %4193 = vadd.xlane.f32.xlu2 %v4192_v12  ;;  %v4178_v52 = vpop.xlane.xlu2 %4177 }
 0xac0   :  { %v4187_v33 = vmul.f32 %v4185_v9, %v4178_v52 }
 0xac2   :  { %v4189_v8 = vsub.f32 %v4172_v1, %v4187_v33 }
 0xac4   :  { %v4191_v7 = vmul.f32 %v4189_v8, %v4189_v8 }
 0xac6   :  { %v4195_v31 = vsel %vm105_vm0, %v4191_v7, 0.0 }
 0xac7   :  { %4196 = vadd.xlane.f32.xlu0 %v4195_v31 }
 0xb32   :  { %v4194_v13 = vpop.xlane.xlu2 %4193 }
 0xb33   :  { %v4198_v15 = vmul.f32 %v4194_v13, %v4185_v9 }
 0xb35   :  { %v4200_v16 = vadd.f32 1e-05, %v4198_v15 }
 0xb37   :  { %4307 = vrsqrt.f32 %v4200_v16  ;;  %vm4208_vm7 = vweird.f32 %v4200_v16 }
 0xb3a   :  { %v4197_v27 = vpop.xlane.xlu0 %4196 }
 0xb3b   :  { %v4199_v32 = vmul.f32 %v4197_v27, %v4185_v9 }
 0xb3d   :  { %v4308_v35 = vpop.eup %4307  ;;  %v4201_v26 = vadd.f32 1e-05, %v4199_v32 }
 0xb3e   :  { %v4203_v36 = vmul.f32 %v4308_v35, %v4200_v16  ;;  %vm4209_vm6 = vweird.f32 %v4308_v35 }
 0xb3f   :  { %4309 = vrsqrt.f32 %v4201_v26  ;;  %vm4210_vm8 = vmor %vm4208_vm7, %vm4209_vm6  ;;  %vm4218_vm10 = vweird.f32 %v4201_v26 }
 0xb40   :  { %v4204_v37 = vmul.f32 %v4308_v35, %v4203_v36 }
 0xb42   :  { %v4205_v38 = vmul.f32 0.5, %v4204_v37 }
 0xb44   :  { %v4206_v39 = vsub.f32 1.5, %v4205_v38 }
 0xb45   :  { %v4310_v40 = vpop.eup %4309 }
 0xb46   :  { %v4207_v41 = vmul.f32 %v4308_v35, %v4206_v39  ;;  %v4213_v42 = vmul.f32 %v4310_v40, %v4201_v26  ;;  %vm4219_vm9 = vweird.f32 %v4310_v40 }
 0xb47   :  { %vm4220_vm11 = vmor %vm4218_vm10, %vm4219_vm9 }
 0xb48   :  { %v4211_v48 = vsel %vm4210_vm8, %v4308_v35, %v4207_v41  ;;  %v4214_v46 = vmul.f32 %v4310_v40, %v4213_v42 }
 0xb49   :  { %v4222_v34 = vmul.f32 %v4211_v48, %v4188_v10 }
 0xb4a   :  { %v4215_v49 = vmul.f32 0.5, %v4214_v46 }
 0xb4b   :  { %v4225_v50 = vmul.f32 %v4224_v43, %v4222_v34 }
 0xb4c   :  { %v4216_v51 = vsub.f32 1.5, %v4215_v49 }
 0xb4d   :  { %v4228_v53 = vadd.f32 %v4227_v47, %v4225_v50 }
 0xb4e   :  { %v4217_v17 = vmul.f32 %v4310_v40, %v4216_v51 }
 0xb4f   :  { %4230 = vst.msk [vmem:[#allocation11] sm:$0xff] %vm105_vm0, %v4228_v53 }
 0xb50   :  { %v4221_v55 = vsel %vm4220_vm11, %v4310_v40, %v4217_v17 }
 0xb51   :  { %v4223_v56 = vmul.f32 %v4221_v55, %v4189_v8 }
 0xb53   :  { %v4226_v21 = vmul.f32 %v4224_v43, %v4223_v56 }
 0xb55   :  { %v4229_v57 = vadd.f32 %v4227_v47, %v4226_v21 }
 0xb57   :  { %4231 = vst.msk [vmem:[#allocation11 + $0x8] sm:$0xff] %vm105_vm0, %v4229_v57 }
 0xb58   :  { %4244 = dma.vmem_to_hbm [thread:$0]  %s4237_s19, 256, %s4239_s22, [#allocation4], %s4465_s26, %s4465_s26, %s4466_s27  }
 0xb59   :  { %4462 = dma.done.wait [#allocation4], 256  }
 0xb5a   :  { %4463 = vsyncadd [#allocation4], 4294967040 }
 0xb5b   :  { %4249 = vsyncpa [#allocation3], 1 }
 0xb5c   :  { %4250 = vsyncpa [#allocation6], 1 }
 0xb5d   :  { %4251 = vsyncpa [#allocation9], 1 }
 0xb5e   :  { %4252 = vsyncpa [#allocation4], 1 }

</bundles_post_ra>
